<compile_context>
chip_gen: v7x
topology: tpu7x:2x2x1
jax: 0.10.0
libtpu: 0.0.40
codegen_flags: <defaults>
</compile_context>

<pallas_src>
import jax
import jax.numpy as jnp
from jax import lax
from jax.experimental import pallas as pl
from jax.experimental.pallas import tpu as pltpu

HIDDEN = 128
INPUT = 34
NUM_CLASSES = 2
FC_PAD = 128      # lane-dense padded width of the FC output
SUBLANE = 8


def lstm_fc_kernel(x_ref, wih_ref, whh_ref, b_ref, wfc_ref, bfc_ref,
                   out_ref, z_ref):
    """Whole LSTM forward + final FC in one invocation.

    x_ref   : (S, Bp, 34)  f32   time-major input (batch padded to Bp)
    wih_ref : (34, 4H)     f32   W_ih^T
    whh_ref : (H, 4H)      f32|bf16   W_hh^T (matmul dtype)
    b_ref   : (1, 4H)      f32   b_ih + b_hh
    wfc_ref : (H, FC_PAD)  f32   W_fc^T zero-padded on the lane dim
    bfc_ref : (1, FC_PAD)  f32   b_fc zero-padded
    out_ref : (Bp, FC_PAD) f32
    z_ref   : (S, Bp, 4H)  f32   VMEM scratch for the precomputed projection
    """
    S, Bp, F = x_ref.shape
    H = whh_ref.shape[0]

    # ---- prologue: non-recurrent input projection, one big matmul ----------
    x_all = x_ref[...].reshape(S * Bp, F)                       # leading-dim merge
    z = jnp.dot(x_all, wih_ref[...], preferred_element_type=jnp.float32)
    z = z + b_ref[...]
    z_ref[...] = z.reshape(S, Bp, 4 * H)

    # ---- recurrence: only the serial h @ W_hh^T stays in the loop ----------
    def step(t, carry):
        h, c = carry
        gates = z_ref[t] + jnp.dot(h.astype(whh_ref.dtype), whh_ref[...],
                                   preferred_element_type=jnp.float32)
        # PyTorch gate order: input, forget, cell(g), output
        i = jax.nn.sigmoid(gates[:, 0 * H:1 * H])
        f = jax.nn.sigmoid(gates[:, 1 * H:2 * H])
        g = jnp.tanh(gates[:, 2 * H:3 * H])
        o = jax.nn.sigmoid(gates[:, 3 * H:4 * H])
        c_new = f * c + i * g
        h_new = o * jnp.tanh(c_new)
        return h_new, c_new

    h0 = jnp.zeros((Bp, H), jnp.float32)
    c0 = jnp.zeros((Bp, H), jnp.float32)
    h_T, _ = lax.fori_loop(0, S, step, (h0, c0), unroll=True)

    # ---- epilogue: final FC on the last hidden state (lane-dense output) ---
    out_ref[...] = (jnp.dot(h_T, wfc_ref[...], preferred_element_type=jnp.float32)
                    + bfc_ref[...]).astype(out_ref.dtype)


def violence_model_forward(x, params, *, recurrent_matmul_dtype=jnp.bfloat16):
    """x: (batch, seq, joints, coords) float32 -> (batch, 2) float32."""
    B, S, J, C = x.shape
    F = J * C
    assert F == INPUT
    Bp = ((B + SUBLANE - 1) // SUBLANE) * SUBLANE   # pad batch to sublane multiple

    xf = x.reshape(B, S, F)
    xk = jnp.transpose(xf, (1, 0, 2))               # time-major (S, B, F)
    if Bp != B:
        xk = jnp.pad(xk, ((0, 0), (0, Bp - B), (0, 0)))

    wih_t = params["w_ih"].T.astype(jnp.float32)                       # (34, 4H)
    whh_t = params["w_hh"].T.astype(recurrent_matmul_dtype)            # (H, 4H)
    b = (params["b_ih"] + params["b_hh"]).reshape(1, 4 * HIDDEN)       # (1, 4H)
    wfc_pad = jnp.zeros((HIDDEN, FC_PAD), jnp.float32)
    wfc_pad = wfc_pad.at[:, :NUM_CLASSES].set(params["w_fc"].T)        # (H, 128)
    bfc_pad = jnp.zeros((1, FC_PAD), jnp.float32)
    bfc_pad = bfc_pad.at[:, :NUM_CLASSES].set(params["b_fc"])          # (1, 128)

    out = pl.pallas_call(
        lstm_fc_kernel,
        out_shape=jax.ShapeDtypeStruct((Bp, FC_PAD), jnp.float32),
        grid_spec=pltpu.PrefetchScalarGridSpec(
            num_scalar_prefetch=0,
            grid=(1,),                                            # single invocation
            in_specs=[
                pl.BlockSpec((S, Bp, F), lambda i: (0, 0, 0)),        # x (all steps)
                pl.BlockSpec((F, 4 * HIDDEN), lambda i: (0, 0)),      # W_ih^T
                pl.BlockSpec((HIDDEN, 4 * HIDDEN), lambda i: (0, 0)), # W_hh^T
                pl.BlockSpec((1, 4 * HIDDEN), lambda i: (0, 0)),      # bias
                pl.BlockSpec((HIDDEN, FC_PAD), lambda i: (0, 0)),     # W_fc^T padded
                pl.BlockSpec((1, FC_PAD), lambda i: (0, 0)),          # b_fc padded
            ],
            out_specs=pl.BlockSpec((Bp, FC_PAD), lambda i: (0, 0)),
            scratch_shapes=[
                pltpu.VMEM((S, Bp, 4 * HIDDEN), jnp.float32),         # Z projection
            ],
        ),
        compiler_params=pltpu.CompilerParams(
            dimension_semantics=("arbitrary",)),
    )(xk, wih_t, whh_t, b, wfc_pad, bfc_pad)

    return out[:B, :NUM_CLASSES]


def reference_forward(x, params):
    """Pure-JAX f32 reference of the PyTorch forward for validation."""
    B, S, J, C = x.shape
    xf = x.reshape(B, S, J * C)

    def step(carry, x_t):
        h, c = carry
        gates = (x_t @ params["w_ih"].T + params["b_ih"]
                 + h @ params["w_hh"].T + params["b_hh"])
        i, f, g, o = jnp.split(gates, 4, axis=-1)
        i = jax.nn.sigmoid(i)
        f = jax.nn.sigmoid(f)
        g = jnp.tanh(g)
        o = jax.nn.sigmoid(o)
        c = f * c + i * g
        h = o * jnp.tanh(c)
        return (h, c), h

    h0 = jnp.zeros((B, HIDDEN), jnp.float32)
    c0 = jnp.zeros((B, HIDDEN), jnp.float32)
    (hT, _), _ = lax.scan(step, (h0, c0), jnp.transpose(xf, (1, 0, 2)))
    return hT @ params["w_fc"].T + params["b_fc"]


def init_params(key):
    """Deterministic init matching PyTorch shapes (uniform(-1/sqrt(H), 1/sqrt(H)))."""
    ks = jax.random.split(key, 6)
    stdv = 1.0 / jnp.sqrt(jnp.float32(HIDDEN))
    u = lambda k, shape: jax.random.uniform(k, shape, jnp.float32, -stdv, stdv)
    return {
        "w_ih": u(ks[0], (4 * HIDDEN, INPUT)),    # lstm.weight_ih_l0
        "w_hh": u(ks[1], (4 * HIDDEN, HIDDEN)),   # lstm.weight_hh_l0
        "b_ih": u(ks[2], (4 * HIDDEN,)),          # lstm.bias_ih_l0
        "b_hh": u(ks[3], (4 * HIDDEN,)),          # lstm.bias_hh_l0
        "w_fc": u(ks[4], (NUM_CLASSES, HIDDEN)),  # fc.weight
        "b_fc": u(ks[5], (NUM_CLASSES,)),         # fc.bias
    }


if __name__ == "__main__":
    key = jax.random.PRNGKey(0)
    k_param, k_x = jax.random.split(key)

    params = init_params(k_param)

    # batch=2, seq=8, joints=17, coords=2  ->  17*2 = 34 input features
    B, S, J, C = 2, 8, 17, 2
    x = jax.random.normal(k_x, (B, S, J, C), jnp.float32)

    ref = jax.block_until_ready(reference_forward(x, params))

    # Exact-semantics path (f32 recurrent matmul) — strict check.
    out_f32 = jax.block_until_ready(
        violence_model_forward(x, params, recurrent_matmul_dtype=jnp.float32))
    assert out_f32.shape == (B, NUM_CLASSES)
    assert jnp.allclose(out_f32, ref, atol=1e-4, rtol=1e-4), (out_f32, ref)

    # Default fast path: bf16 recurrent-matmul operands, f32 accumulation.
    out = jax.block_until_ready(violence_model_forward(x, params))
    assert out.shape == (B, NUM_CLASSES)
    assert jnp.allclose(out, ref, atol=2e-2, rtol=2e-2), (out, ref)

    print("KERNEL_OK")
</pallas_src>

<mosaic_0001>
module attributes {stable_mosaic.version = 11 : i64} {
  func.func @lstm_fc_kernel(%arg0: i32, %arg1: memref<8x8x34xf32, #tpu.memory_space<vmem>>, %arg2: memref<34x512xf32, #tpu.memory_space<vmem>>, %arg3: memref<128x512xf32, #tpu.memory_space<vmem>>, %arg4: memref<1x512xf32, #tpu.memory_space<vmem>>, %arg5: memref<128x128xf32, #tpu.memory_space<vmem>>, %arg6: memref<1x128xf32, #tpu.memory_space<vmem>>, %arg7: memref<8x128xf32, #tpu.memory_space<vmem>>, %arg8: memref<8x8x512xf32, #tpu.memory_space<vmem>>) attributes {dimension_semantics = [#tpu.dimension_semantics<arbitrary>], iteration_bounds = array<i64: 1>, scalar_prefetch = 0 : i64, scratch_operands = 1 : i64, tpu.core_type = #tpu.core_type<tc>, window_params = [{pipeline_mode = #tpu.pipeline_mode<synchronous>, transform_indices = @transform_0, window_bounds = array<i64: 8, 8, 34>}, {pipeline_mode = #tpu.pipeline_mode<synchronous>, transform_indices = @transform_1, window_bounds = array<i64: 34, 512>}, {pipeline_mode = #tpu.pipeline_mode<synchronous>, transform_indices = @transform_2, window_bounds = array<i64: 128, 512>}, {pipeline_mode = #tpu.pipeline_mode<synchronous>, transform_indices = @transform_3, window_bounds = array<i64: 1, 512>}, {pipeline_mode = #tpu.pipeline_mode<synchronous>, transform_indices = @transform_4, window_bounds = array<i64: 128, 128>}, {pipeline_mode = #tpu.pipeline_mode<synchronous>, transform_indices = @transform_5, window_bounds = array<i64: 1, 128>}, {pipeline_mode = #tpu.pipeline_mode<synchronous>, transform_indices = @transform_6, window_bounds = array<i64: 8, 128>}]} {
    %c0 = arith.constant 0 : index
    %c0_0 = arith.constant 0 : index
    %c0_1 = arith.constant 0 : index
    %0 = vector.load %arg1[%c0, %c0_0, %c0_1] : memref<8x8x34xf32, #tpu.memory_space<vmem>>, vector<8x8x34xf32>
    %1 = vector.shape_cast %0 : vector<8x8x34xf32> to vector<64x34xf32>
    %c0_2 = arith.constant 0 : index
    %c0_3 = arith.constant 0 : index
    %2 = vector.load %arg2[%c0_2, %c0_3] : memref<34x512xf32, #tpu.memory_space<vmem>>, vector<34x512xf32>
    %cst = arith.constant dense<0.000000e+00> : vector<64x512xf32>
    %3 = tpu.matmul %1, %2, %cst {dimension_numbers = #tpu.dot_dimension_numbers<[1], [0], [0], [1], [0, 0, 1, 1], [], []>} : vector<64x34xf32>, vector<34x512xf32>, vector<64x512xf32> -> vector<64x512xf32>
    %c0_4 = arith.constant 0 : index
    %c0_5 = arith.constant 0 : index
    %4 = vector.load %arg4[%c0_4, %c0_5] : memref<1x512xf32, #tpu.memory_space<vmem>>, vector<1x512xf32>
    %5 = vector.broadcast %4 : vector<1x512xf32> to vector<64x512xf32>
    %6 = arith.addf %3, %5 : vector<64x512xf32>
    %7 = vector.shape_cast %6 : vector<64x512xf32> to vector<8x8x512xf32>
    %c0_6 = arith.constant 0 : index
    %c0_7 = arith.constant 0 : index
    %c0_8 = arith.constant 0 : index
    %8 = vector.load %arg8[%c0_6, %c0_7, %c0_8] : memref<8x8x512xf32, #tpu.memory_space<vmem>>, vector<8x8x512xf32>
    tpu.vector_store %arg8[%c0_6, %c0_7, %c0_8], %7 {strides = array<i32>} : memref<8x8x512xf32, #tpu.memory_space<vmem>>, vector<8x8x512xf32>,
    %cst_9 = arith.constant 0.000000e+00 : f32
    %9 = vector.broadcast %cst_9 : f32 to vector<8x128xf32>
    %cst_10 = arith.constant 0.000000e+00 : f32
    %10 = vector.broadcast %cst_10 : f32 to vector<8x128xf32>
    %c0_i32 = arith.constant 0 : i32
    %11 = arith.index_cast %c0_i32 : i32 to index
    %c0_11 = arith.constant 0 : index
    %c0_12 = arith.constant 0 : index
    %12 = vector.load %arg8[%11, %c0_11, %c0_12] : memref<8x8x512xf32, #tpu.memory_space<vmem>>, vector<1x8x512xf32>
    %13 = vector.shape_cast %12 : vector<1x8x512xf32> to vector<8x512xf32>
    %c0_13 = arith.constant 0 : index
    %c0_14 = arith.constant 0 : index
    %14 = vector.load %arg3[%c0_13, %c0_14] : memref<128x512xf32, #tpu.memory_space<vmem>>, vector<128x512xf32>
    %cst_15 = arith.constant dense<0.000000e+00> : vector<8x512xf32>
    %15 = tpu.matmul %9, %14, %cst_15 {dimension_numbers = #tpu.dot_dimension_numbers<[1], [0], [0], [1], [0, 0, 1, 1], [], []>} : vector<8x128xf32>, vector<128x512xf32>, vector<8x512xf32> -> vector<8x512xf32>
    %16 = arith.addf %13, %15 : vector<8x512xf32>
    %17 = vector.extract_strided_slice %16 {offsets = [0, 0], sizes = [8, 128], strides = [1, 1]} : vector<8x512xf32> to vector<8x128xf32>
    %18 = arith.negf %17 : vector<8x128xf32>
    %19 = math.exp %18 : vector<8x128xf32>
    %cst_16 = arith.constant 1.000000e+00 : f32
    %20 = vector.broadcast %cst_16 : f32 to vector<8x128xf32>
    %21 = arith.addf %20, %19 : vector<8x128xf32>
    %22 = arith.divf %20, %21 : vector<8x128xf32>
    %23 = vector.extract_strided_slice %16 {offsets = [0, 128], sizes = [8, 128], strides = [1, 1]} : vector<8x512xf32> to vector<8x128xf32>
    %24 = arith.negf %23 : vector<8x128xf32>
    %25 = math.exp %24 : vector<8x128xf32>
    %cst_17 = arith.constant 1.000000e+00 : f32
    %26 = vector.broadcast %cst_17 : f32 to vector<8x128xf32>
    %27 = arith.addf %26, %25 : vector<8x128xf32>
    %28 = arith.divf %26, %27 : vector<8x128xf32>
    %29 = vector.extract_strided_slice %16 {offsets = [0, 256], sizes = [8, 128], strides = [1, 1]} : vector<8x512xf32> to vector<8x128xf32>
    %30 = math.tanh %29 : vector<8x128xf32>
    %31 = vector.extract_strided_slice %16 {offsets = [0, 384], sizes = [8, 128], strides = [1, 1]} : vector<8x512xf32> to vector<8x128xf32>
    %32 = arith.negf %31 : vector<8x128xf32>
    %33 = math.exp %32 : vector<8x128xf32>
    %cst_18 = arith.constant 1.000000e+00 : f32
    %34 = vector.broadcast %cst_18 : f32 to vector<8x128xf32>
    %35 = arith.addf %34, %33 : vector<8x128xf32>
    %36 = arith.divf %34, %35 : vector<8x128xf32>
    %37 = arith.mulf %28, %10 : vector<8x128xf32>
    %38 = arith.mulf %22, %30 : vector<8x128xf32>
    %39 = arith.addf %37, %38 : vector<8x128xf32>
    %40 = math.tanh %39 : vector<8x128xf32>
    %41 = arith.mulf %36, %40 : vector<8x128xf32>
    %c1_i32 = arith.constant 1 : i32
    %42 = arith.index_cast %c1_i32 : i32 to index
    %c0_19 = arith.constant 0 : index
    %c0_20 = arith.constant 0 : index
    %43 = vector.load %arg8[%42, %c0_19, %c0_20] : memref<8x8x512xf32, #tpu.memory_space<vmem>>, vector<1x8x512xf32>
    %44 = vector.shape_cast %43 : vector<1x8x512xf32> to vector<8x512xf32>
    %c0_21 = arith.constant 0 : index
    %c0_22 = arith.constant 0 : index
    %45 = vector.load %arg3[%c0_21, %c0_22] : memref<128x512xf32, #tpu.memory_space<vmem>>, vector<128x512xf32>
    %cst_23 = arith.constant dense<0.000000e+00> : vector<8x512xf32>
    %46 = tpu.matmul %41, %45, %cst_23 {dimension_numbers = #tpu.dot_dimension_numbers<[1], [0], [0], [1], [0, 0, 1, 1], [], []>} : vector<8x128xf32>, vector<128x512xf32>, vector<8x512xf32> -> vector<8x512xf32>
    %47 = arith.addf %44, %46 : vector<8x512xf32>
    %48 = vector.extract_strided_slice %47 {offsets = [0, 0], sizes = [8, 128], strides = [1, 1]} : vector<8x512xf32> to vector<8x128xf32>
    %49 = arith.negf %48 : vector<8x128xf32>
    %50 = math.exp %49 : vector<8x128xf32>
    %cst_24 = arith.constant 1.000000e+00 : f32
    %51 = vector.broadcast %cst_24 : f32 to vector<8x128xf32>
    %52 = arith.addf %51, %50 : vector<8x128xf32>
    %53 = arith.divf %51, %52 : vector<8x128xf32>
    %54 = vector.extract_strided_slice %47 {offsets = [0, 128], sizes = [8, 128], strides = [1, 1]} : vector<8x512xf32> to vector<8x128xf32>
    %55 = arith.negf %54 : vector<8x128xf32>
    %56 = math.exp %55 : vector<8x128xf32>
    %cst_25 = arith.constant 1.000000e+00 : f32
    %57 = vector.broadcast %cst_25 : f32 to vector<8x128xf32>
    %58 = arith.addf %57, %56 : vector<8x128xf32>
    %59 = arith.divf %57, %58 : vector<8x128xf32>
    %60 = vector.extract_strided_slice %47 {offsets = [0, 256], sizes = [8, 128], strides = [1, 1]} : vector<8x512xf32> to vector<8x128xf32>
    %61 = math.tanh %60 : vector<8x128xf32>
    %62 = vector.extract_strided_slice %47 {offsets = [0, 384], sizes = [8, 128], strides = [1, 1]} : vector<8x512xf32> to vector<8x128xf32>
    %63 = arith.negf %62 : vector<8x128xf32>
    %64 = math.exp %63 : vector<8x128xf32>
    %cst_26 = arith.constant 1.000000e+00 : f32
    %65 = vector.broadcast %cst_26 : f32 to vector<8x128xf32>
    %66 = arith.addf %65, %64 : vector<8x128xf32>
    %67 = arith.divf %65, %66 : vector<8x128xf32>
    %68 = arith.mulf %59, %39 : vector<8x128xf32>
    %69 = arith.mulf %53, %61 : vector<8x128xf32>
    %70 = arith.addf %68, %69 : vector<8x128xf32>
    %71 = math.tanh %70 : vector<8x128xf32>
    %72 = arith.mulf %67, %71 : vector<8x128xf32>
    %c2_i32 = arith.constant 2 : i32
    %73 = arith.index_cast %c2_i32 : i32 to index
    %c0_27 = arith.constant 0 : index
    %c0_28 = arith.constant 0 : index
    %74 = vector.load %arg8[%73, %c0_27, %c0_28] : memref<8x8x512xf32, #tpu.memory_space<vmem>>, vector<1x8x512xf32>
    %75 = vector.shape_cast %74 : vector<1x8x512xf32> to vector<8x512xf32>
    %c0_29 = arith.constant 0 : index
    %c0_30 = arith.constant 0 : index
    %76 = vector.load %arg3[%c0_29, %c0_30] : memref<128x512xf32, #tpu.memory_space<vmem>>, vector<128x512xf32>
    %cst_31 = arith.constant dense<0.000000e+00> : vector<8x512xf32>
    %77 = tpu.matmul %72, %76, %cst_31 {dimension_numbers = #tpu.dot_dimension_numbers<[1], [0], [0], [1], [0, 0, 1, 1], [], []>} : vector<8x128xf32>, vector<128x512xf32>, vector<8x512xf32> -> vector<8x512xf32>
    %78 = arith.addf %75, %77 : vector<8x512xf32>
    %79 = vector.extract_strided_slice %78 {offsets = [0, 0], sizes = [8, 128], strides = [1, 1]} : vector<8x512xf32> to vector<8x128xf32>
    %80 = arith.negf %79 : vector<8x128xf32>
    %81 = math.exp %80 : vector<8x128xf32>
    %cst_32 = arith.constant 1.000000e+00 : f32
    %82 = vector.broadcast %cst_32 : f32 to vector<8x128xf32>
    %83 = arith.addf %82, %81 : vector<8x128xf32>
    %84 = arith.divf %82, %83 : vector<8x128xf32>
    %85 = vector.extract_strided_slice %78 {offsets = [0, 128], sizes = [8, 128], strides = [1, 1]} : vector<8x512xf32> to vector<8x128xf32>
    %86 = arith.negf %85 : vector<8x128xf32>
    %87 = math.exp %86 : vector<8x128xf32>
    %cst_33 = arith.constant 1.000000e+00 : f32
    %88 = vector.broadcast %cst_33 : f32 to vector<8x128xf32>
    %89 = arith.addf %88, %87 : vector<8x128xf32>
    %90 = arith.divf %88, %89 : vector<8x128xf32>
    %91 = vector.extract_strided_slice %78 {offsets = [0, 256], sizes = [8, 128], strides = [1, 1]} : vector<8x512xf32> to vector<8x128xf32>
    %92 = math.tanh %91 : vector<8x128xf32>
    %93 = vector.extract_strided_slice %78 {offsets = [0, 384], sizes = [8, 128], strides = [1, 1]} : vector<8x512xf32> to vector<8x128xf32>
    %94 = arith.negf %93 : vector<8x128xf32>
    %95 = math.exp %94 : vector<8x128xf32>
    %cst_34 = arith.constant 1.000000e+00 : f32
    %96 = vector.broadcast %cst_34 : f32 to vector<8x128xf32>
    %97 = arith.addf %96, %95 : vector<8x128xf32>
    %98 = arith.divf %96, %97 : vector<8x128xf32>
    %99 = arith.mulf %90, %70 : vector<8x128xf32>
    %100 = arith.mulf %84, %92 : vector<8x128xf32>
    %101 = arith.addf %99, %100 : vector<8x128xf32>
    %102 = math.tanh %101 : vector<8x128xf32>
    %103 = arith.mulf %98, %102 : vector<8x128xf32>
    %c3_i32 = arith.constant 3 : i32
    %104 = arith.index_cast %c3_i32 : i32 to index
    %c0_35 = arith.constant 0 : index
    %c0_36 = arith.constant 0 : index
    %105 = vector.load %arg8[%104, %c0_35, %c0_36] : memref<8x8x512xf32, #tpu.memory_space<vmem>>, vector<1x8x512xf32>
    %106 = vector.shape_cast %105 : vector<1x8x512xf32> to vector<8x512xf32>
    %c0_37 = arith.constant 0 : index
    %c0_38 = arith.constant 0 : index
    %107 = vector.load %arg3[%c0_37, %c0_38] : memref<128x512xf32, #tpu.memory_space<vmem>>, vector<128x512xf32>
    %cst_39 = arith.constant dense<0.000000e+00> : vector<8x512xf32>
    %108 = tpu.matmul %103, %107, %cst_39 {dimension_numbers = #tpu.dot_dimension_numbers<[1], [0], [0], [1], [0, 0, 1, 1], [], []>} : vector<8x128xf32>, vector<128x512xf32>, vector<8x512xf32> -> vector<8x512xf32>
    %109 = arith.addf %106, %108 : vector<8x512xf32>
    %110 = vector.extract_strided_slice %109 {offsets = [0, 0], sizes = [8, 128], strides = [1, 1]} : vector<8x512xf32> to vector<8x128xf32>
    %111 = arith.negf %110 : vector<8x128xf32>
    %112 = math.exp %111 : vector<8x128xf32>
    %cst_40 = arith.constant 1.000000e+00 : f32
    %113 = vector.broadcast %cst_40 : f32 to vector<8x128xf32>
    %114 = arith.addf %113, %112 : vector<8x128xf32>
    %115 = arith.divf %113, %114 : vector<8x128xf32>
    %116 = vector.extract_strided_slice %109 {offsets = [0, 128], sizes = [8, 128], strides = [1, 1]} : vector<8x512xf32> to vector<8x128xf32>
    %117 = arith.negf %116 : vector<8x128xf32>
    %118 = math.exp %117 : vector<8x128xf32>
    %cst_41 = arith.constant 1.000000e+00 : f32
    %119 = vector.broadcast %cst_41 : f32 to vector<8x128xf32>
    %120 = arith.addf %119, %118 : vector<8x128xf32>
    %121 = arith.divf %119, %120 : vector<8x128xf32>
    %122 = vector.extract_strided_slice %109 {offsets = [0, 256], sizes = [8, 128], strides = [1, 1]} : vector<8x512xf32> to vector<8x128xf32>
    %123 = math.tanh %122 : vector<8x128xf32>
    %124 = vector.extract_strided_slice %109 {offsets = [0, 384], sizes = [8, 128], strides = [1, 1]} : vector<8x512xf32> to vector<8x128xf32>
    %125 = arith.negf %124 : vector<8x128xf32>
    %126 = math.exp %125 : vector<8x128xf32>
    %cst_42 = arith.constant 1.000000e+00 : f32
    %127 = vector.broadcast %cst_42 : f32 to vector<8x128xf32>
    %128 = arith.addf %127, %126 : vector<8x128xf32>
    %129 = arith.divf %127, %128 : vector<8x128xf32>
    %130 = arith.mulf %121, %101 : vector<8x128xf32>
    %131 = arith.mulf %115, %123 : vector<8x128xf32>
    %132 = arith.addf %130, %131 : vector<8x128xf32>
    %133 = math.tanh %132 : vector<8x128xf32>
    %134 = arith.mulf %129, %133 : vector<8x128xf32>
    %c4_i32 = arith.constant 4 : i32
    %135 = arith.index_cast %c4_i32 : i32 to index
    %c0_43 = arith.constant 0 : index
    %c0_44 = arith.constant 0 : index
    %136 = vector.load %arg8[%135, %c0_43, %c0_44] : memref<8x8x512xf32, #tpu.memory_space<vmem>>, vector<1x8x512xf32>
    %137 = vector.shape_cast %136 : vector<1x8x512xf32> to vector<8x512xf32>
    %c0_45 = arith.constant 0 : index
    %c0_46 = arith.constant 0 : index
    %138 = vector.load %arg3[%c0_45, %c0_46] : memref<128x512xf32, #tpu.memory_space<vmem>>, vector<128x512xf32>
    %cst_47 = arith.constant dense<0.000000e+00> : vector<8x512xf32>
    %139 = tpu.matmul %134, %138, %cst_47 {dimension_numbers = #tpu.dot_dimension_numbers<[1], [0], [0], [1], [0, 0, 1, 1], [], []>} : vector<8x128xf32>, vector<128x512xf32>, vector<8x512xf32> -> vector<8x512xf32>
    %140 = arith.addf %137, %139 : vector<8x512xf32>
    %141 = vector.extract_strided_slice %140 {offsets = [0, 0], sizes = [8, 128], strides = [1, 1]} : vector<8x512xf32> to vector<8x128xf32>
    %142 = arith.negf %141 : vector<8x128xf32>
    %143 = math.exp %142 : vector<8x128xf32>
    %cst_48 = arith.constant 1.000000e+00 : f32
    %144 = vector.broadcast %cst_48 : f32 to vector<8x128xf32>
    %145 = arith.addf %144, %143 : vector<8x128xf32>
    %146 = arith.divf %144, %145 : vector<8x128xf32>
    %147 = vector.extract_strided_slice %140 {offsets = [0, 128], sizes = [8, 128], strides = [1, 1]} : vector<8x512xf32> to vector<8x128xf32>
    %148 = arith.negf %147 : vector<8x128xf32>
    %149 = math.exp %148 : vector<8x128xf32>
    %cst_49 = arith.constant 1.000000e+00 : f32
    %150 = vector.broadcast %cst_49 : f32 to vector<8x128xf32>
    %151 = arith.addf %150, %149 : vector<8x128xf32>
    %152 = arith.divf %150, %151 : vector<8x128xf32>
    %153 = vector.extract_strided_slice %140 {offsets = [0, 256], sizes = [8, 128], strides = [1, 1]} : vector<8x512xf32> to vector<8x128xf32>
    %154 = math.tanh %153 : vector<8x128xf32>
    %155 = vector.extract_strided_slice %140 {offsets = [0, 384], sizes = [8, 128], strides = [1, 1]} : vector<8x512xf32> to vector<8x128xf32>
    %156 = arith.negf %155 : vector<8x128xf32>
    %157 = math.exp %156 : vector<8x128xf32>
    %cst_50 = arith.constant 1.000000e+00 : f32
    %158 = vector.broadcast %cst_50 : f32 to vector<8x128xf32>
    %159 = arith.addf %158, %157 : vector<8x128xf32>
    %160 = arith.divf %158, %159 : vector<8x128xf32>
    %161 = arith.mulf %152, %132 : vector<8x128xf32>
    %162 = arith.mulf %146, %154 : vector<8x128xf32>
    %163 = arith.addf %161, %162 : vector<8x128xf32>
    %164 = math.tanh %163 : vector<8x128xf32>
    %165 = arith.mulf %160, %164 : vector<8x128xf32>
    %c5_i32 = arith.constant 5 : i32
    %166 = arith.index_cast %c5_i32 : i32 to index
    %c0_51 = arith.constant 0 : index
    %c0_52 = arith.constant 0 : index
    %167 = vector.load %arg8[%166, %c0_51, %c0_52] : memref<8x8x512xf32, #tpu.memory_space<vmem>>, vector<1x8x512xf32>
    %168 = vector.shape_cast %167 : vector<1x8x512xf32> to vector<8x512xf32>
    %c0_53 = arith.constant 0 : index
    %c0_54 = arith.constant 0 : index
    %169 = vector.load %arg3[%c0_53, %c0_54] : memref<128x512xf32, #tpu.memory_space<vmem>>, vector<128x512xf32>
    %cst_55 = arith.constant dense<0.000000e+00> : vector<8x512xf32>
    %170 = tpu.matmul %165, %169, %cst_55 {dimension_numbers = #tpu.dot_dimension_numbers<[1], [0], [0], [1], [0, 0, 1, 1], [], []>} : vector<8x128xf32>, vector<128x512xf32>, vector<8x512xf32> -> vector<8x512xf32>
    %171 = arith.addf %168, %170 : vector<8x512xf32>
    %172 = vector.extract_strided_slice %171 {offsets = [0, 0], sizes = [8, 128], strides = [1, 1]} : vector<8x512xf32> to vector<8x128xf32>
    %173 = arith.negf %172 : vector<8x128xf32>
    %174 = math.exp %173 : vector<8x128xf32>
    %cst_56 = arith.constant 1.000000e+00 : f32
    %175 = vector.broadcast %cst_56 : f32 to vector<8x128xf32>
    %176 = arith.addf %175, %174 : vector<8x128xf32>
    %177 = arith.divf %175, %176 : vector<8x128xf32>
    %178 = vector.extract_strided_slice %171 {offsets = [0, 128], sizes = [8, 128], strides = [1, 1]} : vector<8x512xf32> to vector<8x128xf32>
    %179 = arith.negf %178 : vector<8x128xf32>
    %180 = math.exp %179 : vector<8x128xf32>
    %cst_57 = arith.constant 1.000000e+00 : f32
    %181 = vector.broadcast %cst_57 : f32 to vector<8x128xf32>
    %182 = arith.addf %181, %180 : vector<8x128xf32>
    %183 = arith.divf %181, %182 : vector<8x128xf32>
    %184 = vector.extract_strided_slice %171 {offsets = [0, 256], sizes = [8, 128], strides = [1, 1]} : vector<8x512xf32> to vector<8x128xf32>
    %185 = math.tanh %184 : vector<8x128xf32>
    %186 = vector.extract_strided_slice %171 {offsets = [0, 384], sizes = [8, 128], strides = [1, 1]} : vector<8x512xf32> to vector<8x128xf32>
    %187 = arith.negf %186 : vector<8x128xf32>
    %188 = math.exp %187 : vector<8x128xf32>
    %cst_58 = arith.constant 1.000000e+00 : f32
    %189 = vector.broadcast %cst_58 : f32 to vector<8x128xf32>
    %190 = arith.addf %189, %188 : vector<8x128xf32>
    %191 = arith.divf %189, %190 : vector<8x128xf32>
    %192 = arith.mulf %183, %163 : vector<8x128xf32>
    %193 = arith.mulf %177, %185 : vector<8x128xf32>
    %194 = arith.addf %192, %193 : vector<8x128xf32>
    %195 = math.tanh %194 : vector<8x128xf32>
    %196 = arith.mulf %191, %195 : vector<8x128xf32>
    %c6_i32 = arith.constant 6 : i32
    %197 = arith.index_cast %c6_i32 : i32 to index
    %c0_59 = arith.constant 0 : index
    %c0_60 = arith.constant 0 : index
    %198 = vector.load %arg8[%197, %c0_59, %c0_60] : memref<8x8x512xf32, #tpu.memory_space<vmem>>, vector<1x8x512xf32>
    %199 = vector.shape_cast %198 : vector<1x8x512xf32> to vector<8x512xf32>
    %c0_61 = arith.constant 0 : index
    %c0_62 = arith.constant 0 : index
    %200 = vector.load %arg3[%c0_61, %c0_62] : memref<128x512xf32, #tpu.memory_space<vmem>>, vector<128x512xf32>
    %cst_63 = arith.constant dense<0.000000e+00> : vector<8x512xf32>
    %201 = tpu.matmul %196, %200, %cst_63 {dimension_numbers = #tpu.dot_dimension_numbers<[1], [0], [0], [1], [0, 0, 1, 1], [], []>} : vector<8x128xf32>, vector<128x512xf32>, vector<8x512xf32> -> vector<8x512xf32>
    %202 = arith.addf %199, %201 : vector<8x512xf32>
    %203 = vector.extract_strided_slice %202 {offsets = [0, 0], sizes = [8, 128], strides = [1, 1]} : vector<8x512xf32> to vector<8x128xf32>
    %204 = arith.negf %203 : vector<8x128xf32>
    %205 = math.exp %204 : vector<8x128xf32>
    %cst_64 = arith.constant 1.000000e+00 : f32
    %206 = vector.broadcast %cst_64 : f32 to vector<8x128xf32>
    %207 = arith.addf %206, %205 : vector<8x128xf32>
    %208 = arith.divf %206, %207 : vector<8x128xf32>
    %209 = vector.extract_strided_slice %202 {offsets = [0, 128], sizes = [8, 128], strides = [1, 1]} : vector<8x512xf32> to vector<8x128xf32>
    %210 = arith.negf %209 : vector<8x128xf32>
    %211 = math.exp %210 : vector<8x128xf32>
    %cst_65 = arith.constant 1.000000e+00 : f32
    %212 = vector.broadcast %cst_65 : f32 to vector<8x128xf32>
    %213 = arith.addf %212, %211 : vector<8x128xf32>
    %214 = arith.divf %212, %213 : vector<8x128xf32>
    %215 = vector.extract_strided_slice %202 {offsets = [0, 256], sizes = [8, 128], strides = [1, 1]} : vector<8x512xf32> to vector<8x128xf32>
    %216 = math.tanh %215 : vector<8x128xf32>
    %217 = vector.extract_strided_slice %202 {offsets = [0, 384], sizes = [8, 128], strides = [1, 1]} : vector<8x512xf32> to vector<8x128xf32>
    %218 = arith.negf %217 : vector<8x128xf32>
    %219 = math.exp %218 : vector<8x128xf32>
    %cst_66 = arith.constant 1.000000e+00 : f32
    %220 = vector.broadcast %cst_66 : f32 to vector<8x128xf32>
    %221 = arith.addf %220, %219 : vector<8x128xf32>
    %222 = arith.divf %220, %221 : vector<8x128xf32>
    %223 = arith.mulf %214, %194 : vector<8x128xf32>
    %224 = arith.mulf %208, %216 : vector<8x128xf32>
    %225 = arith.addf %223, %224 : vector<8x128xf32>
    %226 = math.tanh %225 : vector<8x128xf32>
    %227 = arith.mulf %222, %226 : vector<8x128xf32>
    %c7_i32 = arith.constant 7 : i32
    %228 = arith.index_cast %c7_i32 : i32 to index
    %c0_67 = arith.constant 0 : index
    %c0_68 = arith.constant 0 : index
    %229 = vector.load %arg8[%228, %c0_67, %c0_68] : memref<8x8x512xf32, #tpu.memory_space<vmem>>, vector<1x8x512xf32>
    %230 = vector.shape_cast %229 : vector<1x8x512xf32> to vector<8x512xf32>
    %c0_69 = arith.constant 0 : index
    %c0_70 = arith.constant 0 : index
    %231 = vector.load %arg3[%c0_69, %c0_70] : memref<128x512xf32, #tpu.memory_space<vmem>>, vector<128x512xf32>
    %cst_71 = arith.constant dense<0.000000e+00> : vector<8x512xf32>
    %232 = tpu.matmul %227, %231, %cst_71 {dimension_numbers = #tpu.dot_dimension_numbers<[1], [0], [0], [1], [0, 0, 1, 1], [], []>} : vector<8x128xf32>, vector<128x512xf32>, vector<8x512xf32> -> vector<8x512xf32>
    %233 = arith.addf %230, %232 : vector<8x512xf32>
    %234 = vector.extract_strided_slice %233 {offsets = [0, 0], sizes = [8, 128], strides = [1, 1]} : vector<8x512xf32> to vector<8x128xf32>
    %235 = arith.negf %234 : vector<8x128xf32>
    %236 = math.exp %235 : vector<8x128xf32>
    %cst_72 = arith.constant 1.000000e+00 : f32
    %237 = vector.broadcast %cst_72 : f32 to vector<8x128xf32>
    %238 = arith.addf %237, %236 : vector<8x128xf32>
    %239 = arith.divf %237, %238 : vector<8x128xf32>
    %240 = vector.extract_strided_slice %233 {offsets = [0, 128], sizes = [8, 128], strides = [1, 1]} : vector<8x512xf32> to vector<8x128xf32>
    %241 = arith.negf %240 : vector<8x128xf32>
    %242 = math.exp %241 : vector<8x128xf32>
    %cst_73 = arith.constant 1.000000e+00 : f32
    %243 = vector.broadcast %cst_73 : f32 to vector<8x128xf32>
    %244 = arith.addf %243, %242 : vector<8x128xf32>
    %245 = arith.divf %243, %244 : vector<8x128xf32>
    %246 = vector.extract_strided_slice %233 {offsets = [0, 256], sizes = [8, 128], strides = [1, 1]} : vector<8x512xf32> to vector<8x128xf32>
    %247 = math.tanh %246 : vector<8x128xf32>
    %248 = vector.extract_strided_slice %233 {offsets = [0, 384], sizes = [8, 128], strides = [1, 1]} : vector<8x512xf32> to vector<8x128xf32>
    %249 = arith.negf %248 : vector<8x128xf32>
    %250 = math.exp %249 : vector<8x128xf32>
    %cst_74 = arith.constant 1.000000e+00 : f32
    %251 = vector.broadcast %cst_74 : f32 to vector<8x128xf32>
    %252 = arith.addf %251, %250 : vector<8x128xf32>
    %253 = arith.divf %251, %252 : vector<8x128xf32>
    %254 = arith.mulf %245, %225 : vector<8x128xf32>
    %255 = arith.mulf %239, %247 : vector<8x128xf32>
    %256 = arith.addf %254, %255 : vector<8x128xf32>
    %257 = math.tanh %256 : vector<8x128xf32>
    %258 = arith.mulf %253, %257 : vector<8x128xf32>
    %c8_i32 = arith.constant 8 : i32
    %c0_75 = arith.constant 0 : index
    %c0_76 = arith.constant 0 : index
    %259 = vector.load %arg5[%c0_75, %c0_76] : memref<128x128xf32, #tpu.memory_space<vmem>>, vector<128x128xf32>
    %cst_77 = arith.constant dense<0.000000e+00> : vector<8x128xf32>
    %260 = tpu.matmul %258, %259, %cst_77 {dimension_numbers = #tpu.dot_dimension_numbers<[1], [0], [0], [1], [0, 0, 1, 1], [], []>} : vector<8x128xf32>, vector<128x128xf32>, vector<8x128xf32> -> vector<8x128xf32>
    %c0_78 = arith.constant 0 : index
    %c0_79 = arith.constant 0 : index
    %261 = vector.load %arg6[%c0_78, %c0_79] : memref<1x128xf32, #tpu.memory_space<vmem>>, vector<1x128xf32>
    %262 = vector.broadcast %261 : vector<1x128xf32> to vector<8x128xf32>
    %263 = arith.addf %260, %262 : vector<8x128xf32>
    %c0_80 = arith.constant 0 : index
    %c0_81 = arith.constant 0 : index
    %264 = vector.load %arg7[%c0_80, %c0_81] : memref<8x128xf32, #tpu.memory_space<vmem>>, vector<8x128xf32>
    tpu.vector_store %arg7[%c0_80, %c0_81], %263 {strides = array<i32>} : memref<8x128xf32, #tpu.memory_space<vmem>>, vector<8x128xf32>,
    return
  }
  func.func @transform_0(%arg0: i32) -> (i32, i32, i32) {
    %c0_i32 = arith.constant 0 : i32
    %c0_i32_0 = arith.constant 0 : i32
    %c0_i32_1 = arith.constant 0 : i32
    %c0_i32_2 = arith.constant 0 : i32
    return %c0_i32, %c0_i32_0, %c0_i32_1 : i32, i32, i32
  }
  func.func @transform_1(%arg0: i32) -> (i32, i32) {
    %c0_i32 = arith.constant 0 : i32
    %c0_i32_0 = arith.constant 0 : i32
    %c0_i32_1 = arith.constant 0 : i32
    return %c0_i32, %c0_i32_0 : i32, i32
  }
  func.func @transform_2(%arg0: i32) -> (i32, i32) {
    %c0_i32 = arith.constant 0 : i32
    %c0_i32_0 = arith.constant 0 : i32
    %c0_i32_1 = arith.constant 0 : i32
    return %c0_i32, %c0_i32_0 : i32, i32
  }
  func.func @transform_3(%arg0: i32) -> (i32, i32) {
    %c0_i32 = arith.constant 0 : i32
    %c0_i32_0 = arith.constant 0 : i32
    %c0_i32_1 = arith.constant 0 : i32
    return %c0_i32, %c0_i32_0 : i32, i32
  }
  func.func @transform_4(%arg0: i32) -> (i32, i32) {
    %c0_i32 = arith.constant 0 : i32
    %c0_i32_0 = arith.constant 0 : i32
    %c0_i32_1 = arith.constant 0 : i32
    return %c0_i32, %c0_i32_0 : i32, i32
  }
  func.func @transform_5(%arg0: i32) -> (i32, i32) {
    %c0_i32 = arith.constant 0 : i32
    %c0_i32_0 = arith.constant 0 : i32
    %c0_i32_1 = arith.constant 0 : i32
    return %c0_i32, %c0_i32_0 : i32, i32
  }
  func.func @transform_6(%arg0: i32) -> (i32, i32) {
    %c0_i32 = arith.constant 0 : i32
    %c0_i32_0 = arith.constant 0 : i32
    %c0_i32_1 = arith.constant 0 : i32
    return %c0_i32, %c0_i32_0 : i32, i32
  }
}

</mosaic_0001>

<bundles_post_ra>
// kernel: tpu_custom_call.1
= control target key start
LH: loop header
LB: loop body
LE: loop exit
PB: predicated region body
PF: predicated region fallthrough
CT: control target
= control target key end

     0   :  { %11 = vsyncpa [#allocation4], 0  ;;  %s3545_s0 = inlined_call_operand.hbm [shape: f32[8,8,34], index: 0, kind: input, shape index: {}]   ;;  %s3546_s1 = inlined_call_operand.hbm [shape: f32[34,512], index: 1, kind: input, shape index: {}]   ;;  %s3547_s2 = inlined_call_operand.hbm [shape: f32[128,512], index: 2, kind: input, shape index: {}]   ;;  %s3548_s3 = inlined_call_operand.vmem [shape: f32[1,512], index: 3, kind: input, shape index: {}]   ;;  %s3549_s4 = inlined_call_operand.hbm [shape: f32[128,128], index: 4, kind: input, shape index: {}]   ;;  %s3550_s5 = inlined_call_operand.vmem [shape: f32[1,128], index: 5, kind: input, shape index: {}]   ;;  %s3551_s6 = inlined_call_operand.hbm [shape: f32[8,128], index: 6, kind: output, shape index: {}]  }
   0x1   :  { %12 = vsyncpa [#allocation7], 0 }
   0x2   :  { %13 = vsyncpa [#allocation10], 0 }
   0x3   :  { %14 = vsyncpa [#allocation5], 0  ;;  %s2970_s21 = smov [#allocation6]   ;;  %s2852_s25 = scalar_lea.hbm %s3546_s1, 2560 }
   0x4   :  { %s32_s22 = sshll.u32 %s2970_s21, 4  ;;  %p2853_p0 = scmp.ne.s32.totalorder %s3546_s1, %s2852_s25  ;;  %s33_s22 = int_to_ptr.vmem [resolvable:$true] %s32_s22 }
   0x5   :  { %p2856_p1 = scmp.lt.u32.totalorder %s2852_s25, %s3546_s1 }
   0x7   :  { %p2858_p2 = pnand %p2856_p1, %p2853_p0 }
   0x9   :  { %2861 = shalt.err (!%p2858_p2)
}
   0xa   :  { %s2862_s30 = scalar_lea.vmem %s33_s22, 2560  ;;  %p2867_p4 = scmp.lt.s32.totalorder %s33_s22, %s33_s22 }
   0xb   :  { %p2863_p3 = scmp.ne.s32.totalorder %s33_s22, %s2862_s30  ;;  %p2868_p5 = scmp.lt.s32.totalorder %s2862_s30, %s2862_s30 }
   0xd   :  { %p2869_p6 = por %p2868_p5, %p2867_p4 }
   0xf   :  { %p2870_p7 = pnand %p2869_p6, %p2863_p3 }
  0x11   :  { %2873 = shalt.err (!%p2870_p7)
}
  0x12   :  { %s2971_s7 = smov 512   ;;  %s2972_s8 = smov 32  }
  0x13   :  { %38 = dma.hbm_to_vmem [thread:$0]  %s3546_s1, 2560, %s33_s22, [#allocation7], %s2971_s7, %s2971_s7, %s2972_s8  }
  0x14   :  { %s2973_s11 = smov [#allocation3]   ;;  %s2874_s15 = scalar_lea.hbm %s3545_s0, 1024 }
  0x15   :  { %s20_s12 = sshll.u32 %s2973_s11, 4  ;;  %p2875_p8 = scmp.ne.s32.totalorder %s3545_s0, %s2874_s15  ;;  %s21_s12 = int_to_ptr.vmem [resolvable:$true] %s20_s12 }
  0x16   :  { %p2878_p9 = scmp.lt.u32.totalorder %s2874_s15, %s3545_s0 }
  0x18   :  { %p2880_p10 = pnand %p2878_p9, %p2875_p8 }
  0x1a   :  { %2883 = shalt.err (!%p2880_p10)
}
  0x1b   :  { %s2884_s20 = scalar_lea.vmem %s21_s12, 1024  ;;  %p2889_p12 = scmp.lt.s32.totalorder %s21_s12, %s21_s12 }
  0x1c   :  { %p2885_p11 = scmp.ne.s32.totalorder %s21_s12, %s2884_s20  ;;  %p2890_p13 = scmp.lt.s32.totalorder %s2884_s20, %s2884_s20 }
  0x1e   :  { %p2891_p0 = por %p2890_p13, %p2889_p12 }
  0x20   :  { %p2892_p1 = pnand %p2891_p0, %p2885_p11 }
  0x22   :  { %2895 = shalt.err (!%p2892_p1)
}
  0x23   :  { %s2974_s1 = smov 128   ;;  %s2975_s21 = smov 8  }
  0x24   :  { %26 = dma.hbm_to_vmem [thread:$0]  %s3545_s0, 1024, %s21_s12, [#allocation4], %s2974_s1, %s2974_s1, %s2975_s21  }
  0x25   :  { %s2976_s24 = smov [#allocation8]   ;;  %s2977_s26 = smov [#allocation9]  }
  0x26   :  { %s44_s25 = sshll.u32 %s2976_s24, 4  ;;  %s58_s27 = sshll.u32 %s2977_s26, 4  ;;  %s45_s25 = int_to_ptr.vmem [resolvable:$true] %s44_s25  ;;  %s3047_s27 = int_to_ptr.vmem [resolvable:$true] %s58_s27 }
  0x27   :  { %s2896_s30 = scalar_lea.hbm %s3547_s2, 8192 }
  0x28   :  { %p2897_p2 = scmp.ne.s32.totalorder %s3547_s2, %s2896_s30  ;;  %p2900_p3 = scmp.lt.u32.totalorder %s2896_s30, %s3547_s2 }
  0x2a   :  { %p2902_p4 = pnand %p2900_p3, %p2897_p2 }
  0x2c   :  { %2905 = shalt.err (!%p2902_p4)
}
  0x2d   :  { %s2906_s0 = scalar_lea.vmem %s45_s25, 8192  ;;  %p2911_p6 = scmp.lt.s32.totalorder %s45_s25, %s45_s25 }
  0x2e   :  { %p2907_p5 = scmp.ne.s32.totalorder %s45_s25, %s2906_s0  ;;  %p2912_p7 = scmp.lt.s32.totalorder %s2906_s0, %s2906_s0 }
  0x30   :  { %p2913_p8 = por %p2912_p7, %p2911_p6 }
  0x32   :  { %p2914_p9 = pnand %p2913_p8, %p2907_p5 }
  0x34   :  { %2917 = shalt.err (!%p2914_p9)
}
  0x35   :  { %50 = dma.hbm_to_vmem [thread:$0]  %s3547_s2, 8192, %s45_s25, [#allocation7], %s2971_s7, %s2971_s7, %s2972_s8  }
  0x36   :  { %s2918_s17 = scalar_lea.hbm %s3549_s4, 2048 }
  0x37   :  { %p2919_p10 = scmp.ne.s32.totalorder %s3549_s4, %s2918_s17  ;;  %p2922_p11 = scmp.lt.u32.totalorder %s2918_s17, %s3549_s4 }
  0x39   :  { %p2924_p12 = pnand %p2922_p11, %p2919_p10 }
  0x3b   :  { %2927 = shalt.err (!%p2924_p12)
}
  0x3c   :  { %s2928_s23 = scalar_lea.vmem %s3047_s27, 2048  ;;  %p2933_p0 = scmp.lt.s32.totalorder %s3047_s27, %s3047_s27 }
  0x3d   :  { %p2929_p13 = scmp.ne.s32.totalorder %s3047_s27, %s2928_s23  ;;  %p2934_p1 = scmp.lt.s32.totalorder %s2928_s23, %s2928_s23 }
  0x3f   :  { %p2935_p2 = por %p2934_p1, %p2933_p0 }
  0x41   :  { %p2936_p3 = pnand %p2935_p2, %p2929_p13 }
  0x43   :  { %2939 = shalt.err (!%p2936_p3)
}
  0x44   :  { %64 = dma.hbm_to_vmem [thread:$0]  %s3549_s4, 2048, %s3047_s27, [#allocation10], %s2974_s1, %s2974_s1, %s2975_s21  }
  0x45   :  { %2962 = dma.done.wait [#allocation4], 1024  }
  0x46   :  { %2963 = vsyncadd [#allocation4], 4294966272 }
  0x47   :  { %2964 = dma.done.wait [#allocation7], 10752  }
  0x48   :  { %2965 = vsyncadd [#allocation7], 4294956544 }
  0x49   :  { %2966 = dma.done.wait [#allocation10], 2048  }
  0x4a   :  { %2967 = vsyncadd [#allocation10], 4294965248  ;;  %v2978_v0 = vmov 0.0   ;;  %v88_v1 = vld [vmem:[#allocation6 + $0x8] sm:$0xff]  ;;  %v90_v3 = vld [vmem:[#allocation6 + $0x18] sm:$0xff]  ;;  %vm154_vm0 = vcmask 1041408  }
  0x4b   :  { %231 = vmatprep.mubr.f32.mxu0 %v2978_v0  ;;  %344 = vmatprep.mubr.f32.mxu1 %v2978_v0  ;;  %v92_v2 = vld [vmem:[#allocation6 + $0x28] sm:$0xff]  ;;  %v94_v5 = vld [vmem:[#allocation6 + $0x38] sm:$0xff]  ;;  %v87_v6 = vld [vmem:[#allocation6] sm:$0xff]  ;;  %vm129_vm1 = vcmask 277504   ;;  %vm2980_vm2 = vmmov 0   ;;  %s2981_s21 = smov [#allocation11]  }
  0x4c   :  { %v2096_v4 = vpack.c.bf16 %v92_v2, %v88_v1  ;;  %v91_v7 = vld [vmem:[#allocation6 + $0x20] sm:$0xff]  ;;  %v2104_v8 = vpack.c.bf16 %v94_v5, %v90_v3  ;;  %v89_v10 = vld [vmem:[#allocation6 + $0x10] sm:$0xff]  ;;  %v96_v12 = vld [vmem:[#allocation6 + $0x48] sm:$0xff]  ;;  %s1988_s24 = sshll.u32 %s2981_s21, 4  ;;  %s1989_s24 = int_to_ptr.vmem [resolvable:$true] %s1988_s24 }
  0x4d   :  { %v2098_v9 = vpack.c.bf16 %v91_v7, %v87_v6  ;;  %v93_v11 = vld [vmem:[#allocation6 + $0x30] sm:$0xff]  ;;  %v100_v14 = vld [vmem:[#allocation6 + $0x68] sm:$0xff]  ;;  %v98_v15 = vld [vmem:[#allocation6 + $0x58] sm:$0xff]  ;;  %s2940_s25 = scalar_lea.vmem %s1989_s24, 128  ;;  %p2945_p5 = scmp.lt.s32.totalorder %s1989_s24, %s1989_s24 }
  0x4e   :  { %2097 = vmatprep.subr.bf16.mxu0 %v2096_v4  ;;  %v2106_v13 = vpack.c.bf16 %v93_v11, %v89_v10  ;;  %v102_v16 = vld [vmem:[#allocation6 + $0x78] sm:$0xff]  ;;  %2105 = vmatprep.subr.bf16.mxu1 %v2104_v8  ;;  %v2100_v17 = vpack.c.bf16 %v100_v14, %v96_v12  ;;  %v95_v19 = vld [vmem:[#allocation6 + $0x40] sm:$0xff]  ;;  %v97_v21 = vld [vmem:[#allocation6 + $0x50] sm:$0xff]  ;;  %p2941_p4 = scmp.ne.s32.totalorder %s1989_s24, %s2940_s25  ;;  %p2946_p6 = scmp.lt.s32.totalorder %s2940_s25, %s2940_s25 }
  0x4f   :  { %2099 = vmatpush1.bf16.msra.mxu0 %v2098_v9  ;;  %v2108_v18 = vpack.c.bf16 %v102_v16, %v98_v15  ;;  %v99_v20 = vld [vmem:[#allocation6 + $0x60] sm:$0xff]  ;;  %v101_v23 = vld [vmem:[#allocation6 + $0x70] sm:$0xff]  ;;  %v104_v25 = vld [vmem:[#allocation6 + $0x88] sm:$0x3] }
  0x50   :  { %2107 = vmatpush1.bf16.msra.mxu1 %v2106_v13  ;;  %v2102_v22 = vpack.c.bf16 %v99_v20, %v95_v19  ;;  %2101 = vmatprep.subr.bf16.mxu0 %v2100_v17  ;;  %v2110_v24 = vpack.c.bf16 %v101_v23, %v97_v21  ;;  %v106_v26 = vld [vmem:[#allocation6 + $0x98] sm:$0x3]  ;;  %v430_v27 = vld [vmem:[#allocation8 + $0x8] sm:$0xff]  ;;  %v429_v31 = vld [vmem:[#allocation8] sm:$0xff]  ;;  %p2947_p7 = por %p2946_p6, %p2945_p5 }
  0x51   :  { %2109 = vmatprep.subr.bf16.mxu1 %v2108_v18  ;;  %v434_v28 = vld [vmem:[#allocation8 + $0x28] sm:$0xff]  ;;  %v432_v29 = vld [vmem:[#allocation8 + $0x18] sm:$0xff]  ;;  %v433_v32 = vld [vmem:[#allocation8 + $0x20] sm:$0xff] }
  0x52   :  { %v436_v30 = vld [vmem:[#allocation8 + $0x38] sm:$0xff]  ;;  %v103_v33 = vld [vmem:[#allocation6 + $0x80] sm:$0x3]  ;;  %v431_v34 = vld [vmem:[#allocation8 + $0x10] sm:$0xff]  ;;  %v3088_v38 = vpack.c.bf16 %v434_v28, %v430_v27  ;;  %v3092_v40 = vpack.c.bf16 %v433_v32, %v429_v31  ;;  %p2948_p8 = pnand %p2947_p7, %p2941_p4 }
  0x53   :  { %2103 = vmatpush1.bf16.msra.mxu0 %v2102_v22  ;;  %v435_v35 = vld [vmem:[#allocation8 + $0x30] sm:$0xff]  ;;  %v79_v37 = vld [vmem:[#allocation3] sm:$0xff]  ;;  %v3090_v39 = vpack.c.bf16 %v436_v30, %v432_v29  ;;  %v438_v41 = vld [vmem:[#allocation8 + $0x48] sm:$0xff] }
  0x54   :  { %2111 = vmatpush1.bf16.msra.mxu1 %v2110_v24  ;;  %1999 = vmatprep.subr.msk.mxu0 %vm154_vm0, %v104_v25  ;;  %v105_v36 = vld [vmem:[#allocation6 + $0x90] sm:$0x3]  ;;  %v442_v42 = vld [vmem:[#allocation8 + $0x68] sm:$0xff]  ;;  %v440_v43 = vld [vmem:[#allocation8 + $0x58] sm:$0xff]  ;;  %v3095_v44 = vpack.c.bf16 %v435_v35, %v431_v34 }
  0x55   :  { %2009 = vmatprep.subr.msk.mxu1 %vm154_vm0, %v106_v26  ;;  %v444_v45 = vld [vmem:[#allocation8 + $0x78] sm:$0xff]  ;;  %v437_v46 = vld [vmem:[#allocation8 + $0x40] sm:$0xff]  ;;  %v439_v48 = vld [vmem:[#allocation8 + $0x50] sm:$0xff]  ;;  %v3101_v51 = vpack.c.bf16 %v442_v42, %v438_v41 }
  0x56   :  { %v441_v47 = vld [vmem:[#allocation8 + $0x60] sm:$0xff]  ;;  %v443_v49 = vld [vmem:[#allocation8 + $0x70] sm:$0xff]  ;;  %v80_v50 = vld [vmem:[#allocation3 + $0x8] sm:$0xff]  ;;  %v3105_v52 = vpack.c.bf16 %v444_v45, %v440_v43 }
  0x57   :  { %2000 = vmatpush1.msk.msra.mxu0 %vm154_vm0, %v103_v33  ;;  %v3107_v53 = vpack.c.bf16 %v441_v47, %v437_v46  ;;  %v446_v54 = vld [vmem:[#allocation8 + $0x88] sm:$0xff]  ;;  %v448_v56 = vld [vmem:[#allocation8 + $0x98] sm:$0xff]  ;;  %v3111_v57 = vpack.c.bf16 %v443_v49, %v439_v48  ;;  %v445_v59 = vld [vmem:[#allocation8 + $0x80] sm:$0xff] }
  0x58   :  { %2010 = vmatpush1.msk.msra.mxu1 %vm154_vm0, %v105_v36  ;;  %2001 = vmatmul.mubr.msk.f32.vlgmr.msra.gmra.mrb[0].mxu0 %vm129_vm1, %v79_v37  ;;  %v450_v55 = vld [vmem:[#allocation8 + $0xa8] sm:$0xff]  ;;  %v452_v58 = vld [vmem:[#allocation8 + $0xb8] sm:$0xff]  ;;  %v449_v60 = vld [vmem:[#allocation8 + $0xa0] sm:$0xff] }
  0x59   :  { %2011 = vmatmul.mubr.msk.f32.vlgmr.msra.gmra.mrb[0].mxu1 %vm129_vm1, %v79_v37  ;;  %2113 = vmatprep.subr.bf16.mxu0 %v3088_v38  ;;  %v447_v61 = vld [vmem:[#allocation8 + $0x90] sm:$0xff]  ;;  %v3117_v1 = vpack.c.bf16 %v450_v55, %v446_v54  ;;  %v3121_v2 = vpack.c.bf16 %v452_v58, %v448_v56  ;;  %v3123_v3 = vpack.c.bf16 %v449_v60, %v445_v59  ;;  %v454_v4 = vld [vmem:[#allocation8 + $0xc8] sm:$0xff]  ;;  %v456_v6 = vld [vmem:[#allocation8 + $0xd8] sm:$0xff] }
  0x5a   :  { %2145 = vmatprep.subr.bf16.mxu1 %v3090_v39  ;;  %2115 = vmatpush1.bf16.msra.mxu0 %v3092_v40  ;;  %v451_v62 = vld [vmem:[#allocation8 + $0xb0] sm:$0xff]  ;;  %v458_v5 = vld [vmem:[#allocation8 + $0xe8] sm:$0xff]  ;;  %v460_v8 = vld [vmem:[#allocation8 + $0xf8] sm:$0xff] }
  0x5b   :  { %2147 = vmatpush1.bf16.msra.mxu1 %v3095_v44  ;;  %237 = vmatprep.mubr.f32.mxu0 %v2978_v0  ;;  %v81_v63 = vld [vmem:[#allocation3 + $0x10] sm:$0xff]  ;;  %v3127_v7 = vpack.c.bf16 %v451_v62, %v447_v61  ;;  %v453_v9 = vld [vmem:[#allocation8 + $0xc0] sm:$0xff]  ;;  %v82_v13 = vld [vmem:[#allocation3 + $0x18] sm:$0xff]  ;;  %v3133_v14 = vpack.c.bf16 %v458_v5, %v454_v4  ;;  %v3137_v15 = vpack.c.bf16 %v460_v8, %v456_v6 }
  0x5c   :  { %350 = vmatprep.mubr.f32.mxu1 %v2978_v0  ;;  %2002 = vmatmul.mubr.msk.f32.gmra.mrb[2].mxu0 %vm129_vm1, %v80_v50  ;;  %v457_v10 = vld [vmem:[#allocation8 + $0xe0] sm:$0xff]  ;;  %v455_v11 = vld [vmem:[#allocation8 + $0xd0] sm:$0xff]  ;;  %v462_v17 = vld [vmem:[#allocation8 + $0x108] sm:$0xff] }
  0x5d   :  { %2012 = vmatmul.mubr.msk.f32.gmra.mrb[2].mxu1 %vm129_vm1, %v80_v50  ;;  %2117 = vmatprep.subr.bf16.mxu0 %v3101_v51  ;;  %v459_v12 = vld [vmem:[#allocation8 + $0xf0] sm:$0xff]  ;;  %v3139_v16 = vpack.c.bf16 %v457_v10, %v453_v9  ;;  %v466_v18 = vld [vmem:[#allocation8 + $0x128] sm:$0xff]  ;;  %v464_v19 = vld [vmem:[#allocation8 + $0x118] sm:$0xff] }
  0x5e   :  { %2149 = vmatprep.subr.bf16.mxu1 %v3105_v52  ;;  %2119 = vmatpush1.bf16.msra.mxu0 %v3107_v53  ;;  %v3143_v20 = vpack.c.bf16 %v459_v12, %v455_v11  ;;  %v468_v21 = vld [vmem:[#allocation8 + $0x138] sm:$0xff]  ;;  %v461_v22 = vld [vmem:[#allocation8 + $0x100] sm:$0xff]  ;;  %v463_v24 = vld [vmem:[#allocation8 + $0x110] sm:$0xff]  ;;  %v3149_v27 = vpack.c.bf16 %v466_v18, %v462_v17 }
  0x5f   :  { %2151 = vmatpush1.bf16.msra.mxu1 %v3111_v57  ;;  %243 = vmatprep.mubr.f32.mxu0 %v2978_v0  ;;  %v465_v23 = vld [vmem:[#allocation8 + $0x120] sm:$0xff]  ;;  %v467_v25 = vld [vmem:[#allocation8 + $0x130] sm:$0xff]  ;;  %v3153_v28 = vpack.c.bf16 %v468_v21, %v464_v19  ;;  %v470_v30 = vld [vmem:[#allocation8 + $0x148] sm:$0xff] }
  0x60   :  { %356 = vmatprep.mubr.f32.mxu1 %v2978_v0  ;;  %2003 = vmatmul.mubr.msk.f32.gmra.mrb[4].mxu0 %vm129_vm1, %v81_v63  ;;  %v83_v26 = vld [vmem:[#allocation3 + $0x20] sm:$0xff]  ;;  %v3155_v29 = vpack.c.bf16 %v465_v23, %v461_v22  ;;  %v474_v31 = vld [vmem:[#allocation8 + $0x168] sm:$0xff]  ;;  %v472_v32 = vld [vmem:[#allocation8 + $0x158] sm:$0xff]  ;;  %v3159_v33 = vpack.c.bf16 %v467_v25, %v463_v24  ;;  %v109_v23 = vlaneseq }
  0x61   :  { %2013 = vmatmul.mubr.msk.f32.gmra.mrb[4].mxu1 %vm129_vm1, %v81_v63  ;;  %2121 = vmatprep.subr.bf16.mxu0 %v3117_v1  ;;  %v476_v34 = vld [vmem:[#allocation8 + $0x178] sm:$0xff]  ;;  %v469_v35 = vld [vmem:[#allocation8 + $0x140] sm:$0xff]  ;;  %v471_v37 = vld [vmem:[#allocation8 + $0x150] sm:$0xff]  ;;  %v3165_v43 = vpack.c.bf16 %v474_v31, %v470_v30 }
  0x62   :  { %2153 = vmatprep.subr.bf16.mxu1 %v3121_v2  ;;  %2123 = vmatpush1.bf16.msra.mxu0 %v3123_v3  ;;  %v473_v36 = vld [vmem:[#allocation8 + $0x160] sm:$0xff]  ;;  %v475_v41 = vld [vmem:[#allocation8 + $0x170] sm:$0xff]  ;;  %v84_v42 = vld [vmem:[#allocation3 + $0x28] sm:$0xff]  ;;  %v3169_v45 = vpack.c.bf16 %v476_v34, %v472_v32  ;;  %v110_v24 = vshrl.u32 %v109_v23, 7 }
  0x63   :  { %2155 = vmatpush1.bf16.msra.mxu1 %v3127_v7  ;;  %249 = vmatprep.mubr.f32.mxu0 %v2978_v0  ;;  %v3171_v46 = vpack.c.bf16 %v473_v36, %v469_v35  ;;  %v478_v47 = vld [vmem:[#allocation8 + $0x188] sm:$0xff]  ;;  %v480_v49 = vld [vmem:[#allocation8 + $0x198] sm:$0xff]  ;;  %v3175_v50 = vpack.c.bf16 %v475_v41, %v471_v37  ;;  %v477_v55 = vld [vmem:[#allocation8 + $0x180] sm:$0xff] }
  0x64   :  { %362 = vmatprep.mubr.f32.mxu1 %v2978_v0  ;;  %2004 = vmatmul.mubr.msk.f32.gmra.mrb[6].mxu0 %vm129_vm1, %v82_v13  ;;  %v482_v48 = vld [vmem:[#allocation8 + $0x1a8] sm:$0xff]  ;;  %v484_v54 = vld [vmem:[#allocation8 + $0x1b8] sm:$0xff]  ;;  %v481_v56 = vld [vmem:[#allocation8 + $0x1a0] sm:$0xff]  ;;  %v111_v25 = vsub.s32 0, %v110_v24  ;;  %v115_v30 = vsub.s32 1, %v110_v24  ;;  %v123_v35 = vsub.s32 3, %v110_v24 }
  0x65   :  { %2014 = vmatmul.mubr.msk.f32.gmra.mrb[6].mxu1 %vm129_vm1, %v82_v13  ;;  %2125 = vmatprep.subr.bf16.mxu0 %v3133_v14  ;;  %v479_v58 = vld [vmem:[#allocation8 + $0x190] sm:$0xff]  ;;  %v3181_v61 = vpack.c.bf16 %v482_v48, %v478_v47  ;;  %v3185_v62 = vpack.c.bf16 %v484_v54, %v480_v49  ;;  %v3187_v63 = vpack.c.bf16 %v481_v56, %v477_v55  ;;  %v486_v4 = vld [vmem:[#allocation8 + $0x1c8] sm:$0xff]  ;;  %v488_v6 = vld [vmem:[#allocation8 + $0x1d8] sm:$0xff]  ;;  %v119_v55 = vsub.s32 2, %v110_v24 }
  0x66   :  { %2157 = vmatprep.subr.bf16.mxu1 %v3137_v15  ;;  %2127 = vmatpush1.bf16.msra.mxu0 %v3139_v16  ;;  %v483_v59 = vld [vmem:[#allocation8 + $0x1b0] sm:$0xff]  ;;  %v490_v5 = vld [vmem:[#allocation8 + $0x1e8] sm:$0xff]  ;;  %v492_v9 = vld [vmem:[#allocation8 + $0x1f8] sm:$0xff] }
  0x67   :  { %2159 = vmatpush1.bf16.msra.mxu1 %v3143_v20  ;;  %255 = vmatprep.mubr.f32.mxu0 %v2978_v0  ;;  %v85_v60 = vld [vmem:[#allocation3 + $0x30] sm:$0xff]  ;;  %v3191_v8 = vpack.c.bf16 %v483_v59, %v479_v58  ;;  %v485_v10 = vld [vmem:[#allocation8 + $0x1c0] sm:$0xff]  ;;  %v86_v17 = vld [vmem:[#allocation3 + $0x38] sm:$0xff]  ;;  %v3197_v18 = vpack.c.bf16 %v490_v5, %v486_v4  ;;  %v3201_v19 = vpack.c.bf16 %v492_v9, %v488_v6 }
  0x68   :  { %368 = vmatprep.mubr.f32.mxu1 %v2978_v0  ;;  %2005 = vmatmul.mubr.msk.f32.gmra.mrb[8].mxu0 %vm129_vm1, %v83_v26  ;;  %v489_v11 = vld [vmem:[#allocation8 + $0x1e0] sm:$0xff]  ;;  %v487_v12 = vld [vmem:[#allocation8 + $0x1d0] sm:$0xff] }
  0x69   :  { %2015 = vmatmul.mubr.msk.f32.gmra.mrb[8].mxu1 %vm129_vm1, %v83_v26  ;;  %2129 = vmatprep.subr.bf16.mxu0 %v3149_v27  ;;  %v491_v13 = vld [vmem:[#allocation8 + $0x1f0] sm:$0xff]  ;;  %v3203_v21 = vpack.c.bf16 %v489_v11, %v485_v10  ;;  %v107_v26 = vld [vmem:[%s3548_s3] sm:$0xf] }
  0x6a   :  { %2161 = vmatprep.subr.bf16.mxu1 %v3153_v28  ;;  %2131 = vmatpush1.bf16.msra.mxu0 %v3155_v29  ;;  %v3207_v22 = vpack.c.bf16 %v491_v13, %v487_v12  ;;  %v3259_v31 = vrot.slane %v107_v26, %v111_v25  ;;  %v3261_v32 = vrot.slane %v107_v26, %v115_v30 }
  0x6b   :  { %2163 = vmatpush1.bf16.msra.mxu1 %v3159_v33  ;;  %261 = vmatprep.mubr.f32.mxu0 %v2978_v0  ;;  %v3265_v54 = vrot.slane %v107_v26, %v123_v35  ;;  %v3268_v58 = vrot.slane %v107_v26, %v119_v55 }
  0x6c   :  { %374 = vmatprep.mubr.f32.mxu1 %v2978_v0  ;;  %2006 = vmatmul.mubr.msk.f32.gmra.mrb[10].mxu0 %vm129_vm1, %v84_v42 }
  0x6d   :  { %2016 = vmatmul.mubr.msk.f32.gmra.mrb[10].mxu1 %vm129_vm1, %v84_v42  ;;  %2133 = vmatprep.subr.bf16.mxu0 %v3165_v43 }
  0x6e   :  { %2165 = vmatprep.subr.bf16.mxu1 %v3169_v45  ;;  %2135 = vmatpush1.bf16.msra.mxu0 %v3171_v46 }
  0x6f   :  { %2167 = vmatpush1.bf16.msra.mxu1 %v3175_v50  ;;  %267 = vmatprep.mubr.f32.mxu0 %v2978_v0 }
  0x70   :  { %380 = vmatprep.mubr.f32.mxu1 %v2978_v0  ;;  %2007 = vmatmul.mubr.msk.f32.gmra.mrb[12].mxu0 %vm129_vm1, %v85_v60 }
  0x71   :  { %2017 = vmatmul.mubr.msk.f32.gmra.mrb[12].mxu1 %vm129_vm1, %v85_v60  ;;  %2137 = vmatprep.subr.bf16.mxu0 %v3181_v61 }
  0x72   :  { %2169 = vmatprep.subr.bf16.mxu1 %v3185_v62  ;;  %2139 = vmatpush1.bf16.msra.mxu0 %v3187_v63 }
  0x73   :  { %2171 = vmatpush1.bf16.msra.mxu1 %v3191_v8  ;;  %273 = vmatprep.mubr.f32.mxu0 %v2978_v0 }
  0x74   :  { %386 = vmatprep.mubr.f32.mxu1 %v2978_v0  ;;  %2008 = vmatmul.mubr.msk.f32.gmra.mrb[14].mxu0 %vm129_vm1, %v86_v17 }
  0x75   :  { %2018 = vmatmul.mubr.msk.f32.gmra.mrb[14].mxu1 %vm129_vm1, %v86_v17  ;;  %2141 = vmatprep.subr.bf16.mxu0 %v3197_v18 }
  0x76   :  { %2173 = vmatprep.subr.bf16.mxu1 %v3201_v19  ;;  %2143 = vmatpush1.bf16.msra.mxu0 %v3203_v21 }
  0x77   :  { %2175 = vmatpush1.bf16.msra.mxu1 %v3207_v22  ;;  %557 = vmatprep.mubr.f32.mxu0 %v2978_v0 }
  0x78   :  { %628 = vmatprep.mubr.f32.mxu1 %v2978_v0  ;;  %2177 = vmatprep.subr.bf16.mxu0 %v3088_v38 }
  0x79   :  { %558 = vmatmul.mubr.f32.vlgmr.msra.gmra.mrb[0].mxu0 %v2978_v0  ;;  %2209 = vmatprep.subr.bf16.mxu1 %v3090_v39 }
  0x7a   :  { %629 = vmatmul.mubr.f32.vlgmr.msra.gmra.mrb[0].mxu1 %v2978_v0  ;;  %2179 = vmatpush1.bf16.msra.mxu0 %v3092_v40 }
  0x7b   :  { %2211 = vmatpush1.bf16.msra.mxu1 %v3095_v44  ;;  %2181 = vmatprep.subr.bf16.mxu0 %v3101_v51 }
  0x7c   :  { %2213 = vmatprep.subr.bf16.mxu1 %v3105_v52  ;;  %732 = vmatprep.mubr.f32.mxu0 %v2978_v0 }
  0x7d   :  { %803 = vmatprep.mubr.f32.mxu1 %v2978_v0 }
  0x7e   :  { %2183 = vmatpush1.bf16.msra.mxu0 %v3107_v53 }
  0x7f   :  { %2215 = vmatpush1.bf16.msra.mxu1 %v3111_v57  ;;  %2185 = vmatprep.subr.bf16.mxu0 %v3117_v1 }
  0x80   :  { %2217 = vmatprep.subr.bf16.mxu1 %v3121_v2 }
  0x82   :  { %2187 = vmatpush1.bf16.msra.mxu0 %v3123_v3 }
  0x83   :  { %2219 = vmatpush1.bf16.msra.mxu1 %v3127_v7  ;;  %2189 = vmatprep.subr.bf16.mxu0 %v3133_v14 }
  0x84   :  { %2221 = vmatprep.subr.bf16.mxu1 %v3137_v15 }
  0x86   :  { %2191 = vmatpush1.bf16.msra.mxu0 %v3139_v16 }
  0x87   :  { %2223 = vmatpush1.bf16.msra.mxu1 %v3143_v20  ;;  %2193 = vmatprep.subr.bf16.mxu0 %v3149_v27 }
  0x88   :  { %2225 = vmatprep.subr.bf16.mxu1 %v3153_v28 }
  0x8a   :  { %2195 = vmatpush1.bf16.msra.mxu0 %v3155_v29 }
  0x8b   :  { %2227 = vmatpush1.bf16.msra.mxu1 %v3159_v33  ;;  %2197 = vmatprep.subr.bf16.mxu0 %v3165_v43 }
  0x8c   :  { %2229 = vmatprep.subr.bf16.mxu1 %v3169_v45 }
  0x8e   :  { %2199 = vmatpush1.bf16.msra.mxu0 %v3171_v46 }
  0x8f   :  { %2231 = vmatpush1.bf16.msra.mxu1 %v3175_v50  ;;  %2201 = vmatprep.subr.bf16.mxu0 %v3181_v61 }
  0x90   :  { %2233 = vmatprep.subr.bf16.mxu1 %v3185_v62 }
  0x92   :  { %2203 = vmatpush1.bf16.msra.mxu0 %v3187_v63 }
  0x93   :  { %2235 = vmatpush1.bf16.msra.mxu1 %v3191_v8  ;;  %2205 = vmatprep.subr.bf16.mxu0 %v3197_v18 }
  0x94   :  { %2237 = vmatprep.subr.bf16.mxu1 %v3201_v19 }
  0x96   :  { %2207 = vmatpush1.bf16.msra.mxu0 %v3203_v21 }
  0x97   :  { %2239 = vmatpush1.bf16.msra.mxu1 %v3207_v22  ;;  %2241 = vmatprep.subr.bf16.mxu0 %v3088_v38 }
  0x98   :  { %2273 = vmatprep.subr.bf16.mxu1 %v3090_v39 }
 0x14c   :  { %v559_v34 = vpop.f32.mrb[0].mxu0 }
 0x14d   :  { %v2648_v36 = vadd.f32 %v559_v34, %v3259_v31  ;;  %v630_v37 = vpop.f32.mrb[0].mxu1  ;;  %v561_v41 = vpop.f32.mrb[1].mxu0 }
 0x14e   :  { %v2649_v42 = vadd.f32 %v561_v41, %v3261_v32  ;;  %v632_v47 = vpop.f32.mrb[1].mxu1  ;;  %v2664_v60 = vadd.f32 %v630_v37, %v3268_v58 }
 0x14f   :  { %v2019_v48 = vmul.f32 -1.442695, %v2648_v36  ;;  %v2665_v56 = vadd.f32 %v632_v47, %v3265_v54 }
 0x150   :  { %v2020_v49 = vmul.f32 -1.442695, %v2649_v42 }
 0x151   :  { %2724 = vpow2.f32 %v2019_v48  ;;  %v2021_v59 = vmul.f32 -1.442695, %v2665_v56 }
 0x152   :  { %2726 = vpow2.f32 %v2020_v49 }
 0x153   :  { %2728 = vpow2.f32 %v2021_v59 }
 0x154   :  { %2730 = vtanh.f32 %v2664_v60 }
 0x15b   :  { %v2725_v4 = vpop.eup %2724 }
 0x15c   :  { %v2727_v5 = vpop.eup %2726  ;;  %v642_v6 = vadd.f32 1.0, %v2725_v4 }
 0x15d   :  { %v648_v9 = vadd.f32 1.0, %v2727_v5  ;;  %v2729_v10 = vpop.eup %2728 }
 0x15e   :  { %2732 = vrcp.f32 %v642_v6  ;;  %v2731_v11 = vpop.eup %2730  ;;  %v655_v23 = vadd.f32 1.0, %v2729_v10 }
 0x15f   :  { %2734 = vrcp.f32 %v648_v9 }
 0x160   :  { %2736 = vrcp.f32 %v655_v23 }
 0x168   :  { %v2733_v12 = vpop.eup %2732 }
 0x169   :  { %v2735_v13 = vpop.eup %2734  ;;  %v659_v17 = vmul.f32 %v2733_v12, %v2731_v11 }
 0x16a   :  { %v658_v24 = vmul.f32 0.0, %v2735_v13  ;;  %v2737_v26 = vpop.eup %2736 }
 0x16c   :  { %v3271_v25 = vadd.f32 %v659_v17, %v658_v24 }
 0x16e   :  { %2738 = vtanh.f32 %v3271_v25 }
 0x178   :  { %v2739_v30 = vpop.eup %2738 }
 0x179   :  { %v662_v34 = vmul.f32 %v2739_v30, %v2737_v26 }
 0x17b   :  { %733 = vmatmul.mubr.f32.vlgmr.msra.gmra.mrb[2].mxu0 %v662_v34  ;;  %804 = vmatmul.mubr.f32.vlgmr.msra.gmra.mrb[2].mxu1 %v662_v34 }
 0x17c   :  { %2243 = vmatpush1.bf16.msra.mxu0 %v3092_v40  ;;  %2275 = vmatpush1.bf16.msra.mxu1 %v3095_v44 }
 0x17d   :  { %2245 = vmatprep.subr.bf16.mxu0 %v3101_v51  ;;  %2277 = vmatprep.subr.bf16.mxu1 %v3105_v52 }
 0x17e   :  { %907 = vmatprep.mubr.f32.mxu0 %v2978_v0  ;;  %978 = vmatprep.mubr.f32.mxu1 %v2978_v0 }
 0x180   :  { %2247 = vmatpush1.bf16.msra.mxu0 %v3107_v53  ;;  %2279 = vmatpush1.bf16.msra.mxu1 %v3111_v57 }
 0x181   :  { %2249 = vmatprep.subr.bf16.mxu0 %v3117_v1  ;;  %2281 = vmatprep.subr.bf16.mxu1 %v3121_v2 }
 0x184   :  { %2251 = vmatpush1.bf16.msra.mxu0 %v3123_v3  ;;  %2283 = vmatpush1.bf16.msra.mxu1 %v3127_v7 }
 0x185   :  { %2253 = vmatprep.subr.bf16.mxu0 %v3133_v14  ;;  %2285 = vmatprep.subr.bf16.mxu1 %v3137_v15 }
 0x188   :  { %2255 = vmatpush1.bf16.msra.mxu0 %v3139_v16  ;;  %2287 = vmatpush1.bf16.msra.mxu1 %v3143_v20 }
 0x189   :  { %2257 = vmatprep.subr.bf16.mxu0 %v3149_v27  ;;  %2289 = vmatprep.subr.bf16.mxu1 %v3153_v28 }
 0x18c   :  { %2259 = vmatpush1.bf16.msra.mxu0 %v3155_v29  ;;  %2291 = vmatpush1.bf16.msra.mxu1 %v3159_v33 }
 0x18d   :  { %2261 = vmatprep.subr.bf16.mxu0 %v3165_v43  ;;  %2293 = vmatprep.subr.bf16.mxu1 %v3169_v45 }
 0x190   :  { %2263 = vmatpush1.bf16.msra.mxu0 %v3171_v46  ;;  %2295 = vmatpush1.bf16.msra.mxu1 %v3175_v50 }
 0x191   :  { %2265 = vmatprep.subr.bf16.mxu0 %v3181_v61  ;;  %2297 = vmatprep.subr.bf16.mxu1 %v3185_v62 }
 0x194   :  { %2267 = vmatpush1.bf16.msra.mxu0 %v3187_v63  ;;  %2299 = vmatpush1.bf16.msra.mxu1 %v3191_v8 }
 0x195   :  { %2269 = vmatprep.subr.bf16.mxu0 %v3197_v18  ;;  %2301 = vmatprep.subr.bf16.mxu1 %v3201_v19 }
 0x198   :  { %2271 = vmatpush1.bf16.msra.mxu0 %v3203_v21  ;;  %2303 = vmatpush1.bf16.msra.mxu1 %v3207_v22 }
 0x199   :  { %2305 = vmatprep.subr.bf16.mxu0 %v3088_v38  ;;  %2337 = vmatprep.subr.bf16.mxu1 %v3090_v39 }
 0x24e   :  { %v734_v35 = vpop.f32.mrb[2].mxu0  ;;  %v805_v36 = vpop.f32.mrb[2].mxu1 }
 0x24f   :  { %v2650_v37 = vadd.f32 %v734_v35, %v3259_v31  ;;  %v736_v41 = vpop.f32.mrb[3].mxu0  ;;  %v807_v42 = vpop.f32.mrb[3].mxu1  ;;  %v2666_v59 = vadd.f32 %v805_v36, %v3268_v58 }
 0x250   :  { %v2651_v47 = vadd.f32 %v736_v41, %v3261_v32  ;;  %v2667_v55 = vadd.f32 %v807_v42, %v3265_v54 }
 0x251   :  { %v2022_v48 = vmul.f32 -1.442695, %v2650_v37 }
 0x252   :  { %v2023_v49 = vmul.f32 -1.442695, %v2651_v47  ;;  %v2024_v56 = vmul.f32 -1.442695, %v2667_v55 }
 0x253   :  { %2740 = vpow2.f32 %v2022_v48 }
 0x254   :  { %2742 = vpow2.f32 %v2023_v49 }
 0x255   :  { %2744 = vpow2.f32 %v2024_v56 }
 0x256   :  { %2746 = vtanh.f32 %v2666_v59 }
 0x25d   :  { %v2741_v60 = vpop.eup %2740 }
 0x25e   :  { %v2743_v4 = vpop.eup %2742  ;;  %v817_v5 = vadd.f32 1.0, %v2741_v60 }
 0x25f   :  { %v823_v6 = vadd.f32 1.0, %v2743_v4  ;;  %v2745_v9 = vpop.eup %2744 }
 0x260   :  { %2748 = vrcp.f32 %v817_v5  ;;  %v2747_v10 = vpop.eup %2746  ;;  %v830_v17 = vadd.f32 1.0, %v2745_v9 }
 0x261   :  { %2750 = vrcp.f32 %v823_v6 }
 0x262   :  { %2752 = vrcp.f32 %v830_v17 }
 0x26a   :  { %v2749_v11 = vpop.eup %2748 }
 0x26b   :  { %v2751_v12 = vpop.eup %2750  ;;  %v834_v13 = vmul.f32 %v2749_v11, %v2747_v10 }
 0x26c   :  { %v833_v23 = vmul.f32 %v2751_v12, %v3271_v25  ;;  %v2753_v26 = vpop.eup %2752 }
 0x26e   :  { %v3313_v24 = vadd.f32 %v834_v13, %v833_v23 }
 0x270   :  { %2754 = vtanh.f32 %v3313_v24 }
 0x27a   :  { %v2755_v30 = vpop.eup %2754 }
 0x27b   :  { %v837_v34 = vmul.f32 %v2755_v30, %v2753_v26 }
 0x27d   :  { %908 = vmatmul.mubr.f32.vlgmr.msra.gmra.mrb[4].mxu0 %v837_v34  ;;  %979 = vmatmul.mubr.f32.vlgmr.msra.gmra.mrb[4].mxu1 %v837_v34 }
 0x27e   :  { %2307 = vmatpush1.bf16.msra.mxu0 %v3092_v40  ;;  %2339 = vmatpush1.bf16.msra.mxu1 %v3095_v44 }
 0x27f   :  { %2309 = vmatprep.subr.bf16.mxu0 %v3101_v51  ;;  %2341 = vmatprep.subr.bf16.mxu1 %v3105_v52 }
 0x280   :  { %1082 = vmatprep.mubr.f32.mxu0 %v2978_v0  ;;  %1153 = vmatprep.mubr.f32.mxu1 %v2978_v0 }
 0x282   :  { %2311 = vmatpush1.bf16.msra.mxu0 %v3107_v53  ;;  %2343 = vmatpush1.bf16.msra.mxu1 %v3111_v57 }
 0x283   :  { %2313 = vmatprep.subr.bf16.mxu0 %v3117_v1  ;;  %2345 = vmatprep.subr.bf16.mxu1 %v3121_v2 }
 0x286   :  { %2315 = vmatpush1.bf16.msra.mxu0 %v3123_v3  ;;  %2347 = vmatpush1.bf16.msra.mxu1 %v3127_v7 }
 0x287   :  { %2317 = vmatprep.subr.bf16.mxu0 %v3133_v14  ;;  %2349 = vmatprep.subr.bf16.mxu1 %v3137_v15 }
 0x28a   :  { %2319 = vmatpush1.bf16.msra.mxu0 %v3139_v16  ;;  %2351 = vmatpush1.bf16.msra.mxu1 %v3143_v20 }
 0x28b   :  { %2321 = vmatprep.subr.bf16.mxu0 %v3149_v27  ;;  %2353 = vmatprep.subr.bf16.mxu1 %v3153_v28 }
 0x28e   :  { %2323 = vmatpush1.bf16.msra.mxu0 %v3155_v29  ;;  %2355 = vmatpush1.bf16.msra.mxu1 %v3159_v33 }
 0x28f   :  { %2325 = vmatprep.subr.bf16.mxu0 %v3165_v43  ;;  %2357 = vmatprep.subr.bf16.mxu1 %v3169_v45 }
 0x292   :  { %2327 = vmatpush1.bf16.msra.mxu0 %v3171_v46  ;;  %2359 = vmatpush1.bf16.msra.mxu1 %v3175_v50 }
 0x293   :  { %2329 = vmatprep.subr.bf16.mxu0 %v3181_v61  ;;  %2361 = vmatprep.subr.bf16.mxu1 %v3185_v62 }
 0x296   :  { %2331 = vmatpush1.bf16.msra.mxu0 %v3187_v63  ;;  %2363 = vmatpush1.bf16.msra.mxu1 %v3191_v8 }
 0x297   :  { %2333 = vmatprep.subr.bf16.mxu0 %v3197_v18  ;;  %2365 = vmatprep.subr.bf16.mxu1 %v3201_v19 }
 0x29a   :  { %2335 = vmatpush1.bf16.msra.mxu0 %v3203_v21  ;;  %2367 = vmatpush1.bf16.msra.mxu1 %v3207_v22 }
 0x29b   :  { %2369 = vmatprep.subr.bf16.mxu0 %v3088_v38  ;;  %2401 = vmatprep.subr.bf16.mxu1 %v3090_v39 }
 0x350   :  { %v909_v25 = vpop.f32.mrb[4].mxu0  ;;  %v980_v35 = vpop.f32.mrb[4].mxu1 }
 0x351   :  { %v2652_v36 = vadd.f32 %v909_v25, %v3259_v31  ;;  %v911_v37 = vpop.f32.mrb[5].mxu0  ;;  %v982_v41 = vpop.f32.mrb[5].mxu1  ;;  %v2668_v56 = vadd.f32 %v980_v35, %v3268_v58 }
 0x352   :  { %v2653_v42 = vadd.f32 %v911_v37, %v3261_v32  ;;  %v2669_v49 = vadd.f32 %v982_v41, %v3265_v54 }
 0x353   :  { %v2025_v47 = vmul.f32 -1.442695, %v2652_v36 }
 0x354   :  { %v2026_v48 = vmul.f32 -1.442695, %v2653_v42  ;;  %v2027_v55 = vmul.f32 -1.442695, %v2669_v49 }
 0x355   :  { %2756 = vpow2.f32 %v2025_v47 }
 0x356   :  { %2758 = vpow2.f32 %v2026_v48 }
 0x357   :  { %2760 = vpow2.f32 %v2027_v55 }
 0x358   :  { %2762 = vtanh.f32 %v2668_v56 }
 0x35f   :  { %v2757_v59 = vpop.eup %2756 }
 0x360   :  { %v2759_v60 = vpop.eup %2758  ;;  %v992_v4 = vadd.f32 1.0, %v2757_v59 }
 0x361   :  { %v998_v5 = vadd.f32 1.0, %v2759_v60  ;;  %v2761_v6 = vpop.eup %2760 }
 0x362   :  { %2764 = vrcp.f32 %v992_v4  ;;  %v2763_v9 = vpop.eup %2762  ;;  %v1005_v13 = vadd.f32 1.0, %v2761_v6 }
 0x363   :  { %2766 = vrcp.f32 %v998_v5 }
 0x364   :  { %2768 = vrcp.f32 %v1005_v13 }
 0x36c   :  { %v2765_v10 = vpop.eup %2764 }
 0x36d   :  { %v2767_v11 = vpop.eup %2766  ;;  %v1009_v12 = vmul.f32 %v2765_v10, %v2763_v9 }
 0x36e   :  { %v1008_v17 = vmul.f32 %v2767_v11, %v3313_v24  ;;  %v2769_v26 = vpop.eup %2768 }
 0x370   :  { %v3355_v23 = vadd.f32 %v1009_v12, %v1008_v17 }
 0x372   :  { %2770 = vtanh.f32 %v3355_v23 }
 0x37c   :  { %v2771_v30 = vpop.eup %2770 }
 0x37d   :  { %v1012_v34 = vmul.f32 %v2771_v30, %v2769_v26 }
 0x37f   :  { %1083 = vmatmul.mubr.f32.vlgmr.msra.gmra.mrb[6].mxu0 %v1012_v34  ;;  %1154 = vmatmul.mubr.f32.vlgmr.msra.gmra.mrb[6].mxu1 %v1012_v34 }
 0x380   :  { %2371 = vmatpush1.bf16.msra.mxu0 %v3092_v40  ;;  %2403 = vmatpush1.bf16.msra.mxu1 %v3095_v44 }
 0x381   :  { %2373 = vmatprep.subr.bf16.mxu0 %v3101_v51  ;;  %2405 = vmatprep.subr.bf16.mxu1 %v3105_v52 }
 0x382   :  { %1257 = vmatprep.mubr.f32.mxu0 %v2978_v0  ;;  %1328 = vmatprep.mubr.f32.mxu1 %v2978_v0 }
 0x384   :  { %2375 = vmatpush1.bf16.msra.mxu0 %v3107_v53  ;;  %2407 = vmatpush1.bf16.msra.mxu1 %v3111_v57 }
 0x385   :  { %2377 = vmatprep.subr.bf16.mxu0 %v3117_v1  ;;  %2409 = vmatprep.subr.bf16.mxu1 %v3121_v2 }
 0x388   :  { %2379 = vmatpush1.bf16.msra.mxu0 %v3123_v3  ;;  %2411 = vmatpush1.bf16.msra.mxu1 %v3127_v7 }
 0x389   :  { %2381 = vmatprep.subr.bf16.mxu0 %v3133_v14  ;;  %2413 = vmatprep.subr.bf16.mxu1 %v3137_v15 }
 0x38c   :  { %2383 = vmatpush1.bf16.msra.mxu0 %v3139_v16  ;;  %2415 = vmatpush1.bf16.msra.mxu1 %v3143_v20 }
 0x38d   :  { %2385 = vmatprep.subr.bf16.mxu0 %v3149_v27  ;;  %2417 = vmatprep.subr.bf16.mxu1 %v3153_v28 }
 0x390   :  { %2387 = vmatpush1.bf16.msra.mxu0 %v3155_v29  ;;  %2419 = vmatpush1.bf16.msra.mxu1 %v3159_v33 }
 0x391   :  { %2389 = vmatprep.subr.bf16.mxu0 %v3165_v43  ;;  %2421 = vmatprep.subr.bf16.mxu1 %v3169_v45 }
 0x394   :  { %2391 = vmatpush1.bf16.msra.mxu0 %v3171_v46  ;;  %2423 = vmatpush1.bf16.msra.mxu1 %v3175_v50 }
 0x395   :  { %2393 = vmatprep.subr.bf16.mxu0 %v3181_v61  ;;  %2425 = vmatprep.subr.bf16.mxu1 %v3185_v62 }
 0x398   :  { %2395 = vmatpush1.bf16.msra.mxu0 %v3187_v63  ;;  %2427 = vmatpush1.bf16.msra.mxu1 %v3191_v8 }
 0x399   :  { %2397 = vmatprep.subr.bf16.mxu0 %v3197_v18  ;;  %2429 = vmatprep.subr.bf16.mxu1 %v3201_v19 }
 0x39c   :  { %2399 = vmatpush1.bf16.msra.mxu0 %v3203_v21  ;;  %2431 = vmatpush1.bf16.msra.mxu1 %v3207_v22 }
 0x39d   :  { %2433 = vmatprep.subr.bf16.mxu0 %v3088_v38  ;;  %2465 = vmatprep.subr.bf16.mxu1 %v3090_v39 }
 0x452   :  { %v1084_v24 = vpop.f32.mrb[6].mxu0  ;;  %v1155_v25 = vpop.f32.mrb[6].mxu1 }
 0x453   :  { %v2654_v35 = vadd.f32 %v1084_v24, %v3259_v31  ;;  %v1086_v36 = vpop.f32.mrb[7].mxu0  ;;  %v1157_v37 = vpop.f32.mrb[7].mxu1  ;;  %v2670_v55 = vadd.f32 %v1155_v25, %v3268_v58 }
 0x454   :  { %v2655_v41 = vadd.f32 %v1086_v36, %v3261_v32  ;;  %v2671_v48 = vadd.f32 %v1157_v37, %v3265_v54 }
 0x455   :  { %v2028_v42 = vmul.f32 -1.442695, %v2654_v35 }
 0x456   :  { %v2029_v47 = vmul.f32 -1.442695, %v2655_v41  ;;  %v2030_v49 = vmul.f32 -1.442695, %v2671_v48 }
 0x457   :  { %2772 = vpow2.f32 %v2028_v42 }
 0x458   :  { %2774 = vpow2.f32 %v2029_v47 }
 0x459   :  { %2776 = vpow2.f32 %v2030_v49 }
 0x45a   :  { %2778 = vtanh.f32 %v2670_v55 }
 0x461   :  { %v2773_v56 = vpop.eup %2772 }
 0x462   :  { %v2775_v59 = vpop.eup %2774  ;;  %v1167_v60 = vadd.f32 1.0, %v2773_v56 }
 0x463   :  { %v1173_v4 = vadd.f32 1.0, %v2775_v59  ;;  %v2777_v5 = vpop.eup %2776 }
 0x464   :  { %2780 = vrcp.f32 %v1167_v60  ;;  %v2779_v6 = vpop.eup %2778  ;;  %v1180_v12 = vadd.f32 1.0, %v2777_v5 }
 0x465   :  { %2782 = vrcp.f32 %v1173_v4 }
 0x466   :  { %2784 = vrcp.f32 %v1180_v12 }
 0x46e   :  { %v2781_v9 = vpop.eup %2780 }
 0x46f   :  { %v2783_v10 = vpop.eup %2782  ;;  %v1184_v11 = vmul.f32 %v2781_v9, %v2779_v6 }
 0x470   :  { %v1183_v13 = vmul.f32 %v2783_v10, %v3355_v23  ;;  %v2785_v26 = vpop.eup %2784 }
 0x472   :  { %v3397_v17 = vadd.f32 %v1184_v11, %v1183_v13 }
 0x474   :  { %2786 = vtanh.f32 %v3397_v17 }
 0x47e   :  { %v2787_v30 = vpop.eup %2786 }
 0x47f   :  { %v1187_v34 = vmul.f32 %v2787_v30, %v2785_v26 }
 0x481   :  { %1258 = vmatmul.mubr.f32.vlgmr.msra.gmra.mrb[8].mxu0 %v1187_v34  ;;  %1329 = vmatmul.mubr.f32.vlgmr.msra.gmra.mrb[8].mxu1 %v1187_v34 }
 0x482   :  { %2435 = vmatpush1.bf16.msra.mxu0 %v3092_v40  ;;  %2467 = vmatpush1.bf16.msra.mxu1 %v3095_v44 }
 0x483   :  { %2437 = vmatprep.subr.bf16.mxu0 %v3101_v51  ;;  %2469 = vmatprep.subr.bf16.mxu1 %v3105_v52 }
 0x484   :  { %1432 = vmatprep.mubr.f32.mxu0 %v2978_v0  ;;  %1503 = vmatprep.mubr.f32.mxu1 %v2978_v0 }
 0x486   :  { %2439 = vmatpush1.bf16.msra.mxu0 %v3107_v53  ;;  %2471 = vmatpush1.bf16.msra.mxu1 %v3111_v57 }
 0x487   :  { %2441 = vmatprep.subr.bf16.mxu0 %v3117_v1  ;;  %2473 = vmatprep.subr.bf16.mxu1 %v3121_v2 }
 0x48a   :  { %2443 = vmatpush1.bf16.msra.mxu0 %v3123_v3  ;;  %2475 = vmatpush1.bf16.msra.mxu1 %v3127_v7 }
 0x48b   :  { %2445 = vmatprep.subr.bf16.mxu0 %v3133_v14  ;;  %2477 = vmatprep.subr.bf16.mxu1 %v3137_v15 }
 0x48e   :  { %2447 = vmatpush1.bf16.msra.mxu0 %v3139_v16  ;;  %2479 = vmatpush1.bf16.msra.mxu1 %v3143_v20 }
 0x48f   :  { %2449 = vmatprep.subr.bf16.mxu0 %v3149_v27  ;;  %2481 = vmatprep.subr.bf16.mxu1 %v3153_v28 }
 0x492   :  { %2451 = vmatpush1.bf16.msra.mxu0 %v3155_v29  ;;  %2483 = vmatpush1.bf16.msra.mxu1 %v3159_v33 }
 0x493   :  { %2453 = vmatprep.subr.bf16.mxu0 %v3165_v43  ;;  %2485 = vmatprep.subr.bf16.mxu1 %v3169_v45 }
 0x496   :  { %2455 = vmatpush1.bf16.msra.mxu0 %v3171_v46  ;;  %2487 = vmatpush1.bf16.msra.mxu1 %v3175_v50 }
 0x497   :  { %2457 = vmatprep.subr.bf16.mxu0 %v3181_v61  ;;  %2489 = vmatprep.subr.bf16.mxu1 %v3185_v62 }
 0x49a   :  { %2459 = vmatpush1.bf16.msra.mxu0 %v3187_v63  ;;  %2491 = vmatpush1.bf16.msra.mxu1 %v3191_v8 }
 0x49b   :  { %2461 = vmatprep.subr.bf16.mxu0 %v3197_v18  ;;  %2493 = vmatprep.subr.bf16.mxu1 %v3201_v19 }
 0x49e   :  { %2463 = vmatpush1.bf16.msra.mxu0 %v3203_v21  ;;  %2495 = vmatpush1.bf16.msra.mxu1 %v3207_v22 }
 0x49f   :  { %2497 = vmatprep.subr.bf16.mxu0 %v3088_v38  ;;  %2529 = vmatprep.subr.bf16.mxu1 %v3090_v39 }
 0x554   :  { %v1259_v23 = vpop.f32.mrb[8].mxu0  ;;  %v1330_v24 = vpop.f32.mrb[8].mxu1 }
 0x555   :  { %v2656_v25 = vadd.f32 %v1259_v23, %v3259_v31  ;;  %v1261_v35 = vpop.f32.mrb[9].mxu0  ;;  %v1332_v36 = vpop.f32.mrb[9].mxu1  ;;  %v2672_v49 = vadd.f32 %v1330_v24, %v3268_v58 }
 0x556   :  { %v2657_v37 = vadd.f32 %v1261_v35, %v3261_v32  ;;  %v2673_v47 = vadd.f32 %v1332_v36, %v3265_v54 }
 0x557   :  { %v2031_v41 = vmul.f32 -1.442695, %v2656_v25 }
 0x558   :  { %v2032_v42 = vmul.f32 -1.442695, %v2657_v37  ;;  %v2033_v48 = vmul.f32 -1.442695, %v2673_v47 }
 0x559   :  { %2788 = vpow2.f32 %v2031_v41 }
 0x55a   :  { %2790 = vpow2.f32 %v2032_v42 }
 0x55b   :  { %2792 = vpow2.f32 %v2033_v48 }
 0x55c   :  { %2794 = vtanh.f32 %v2672_v49 }
 0x563   :  { %v2789_v55 = vpop.eup %2788 }
 0x564   :  { %v2791_v56 = vpop.eup %2790  ;;  %v1342_v59 = vadd.f32 1.0, %v2789_v55 }
 0x565   :  { %v1348_v60 = vadd.f32 1.0, %v2791_v56  ;;  %v2793_v4 = vpop.eup %2792 }
 0x566   :  { %2796 = vrcp.f32 %v1342_v59  ;;  %v2795_v5 = vpop.eup %2794  ;;  %v1355_v11 = vadd.f32 1.0, %v2793_v4 }
 0x567   :  { %2798 = vrcp.f32 %v1348_v60 }
 0x568   :  { %2800 = vrcp.f32 %v1355_v11 }
 0x570   :  { %v2797_v6 = vpop.eup %2796 }
 0x571   :  { %v2799_v9 = vpop.eup %2798  ;;  %v1359_v10 = vmul.f32 %v2797_v6, %v2795_v5 }
 0x572   :  { %v1358_v12 = vmul.f32 %v2799_v9, %v3397_v17  ;;  %v2801_v26 = vpop.eup %2800 }
 0x574   :  { %v3439_v13 = vadd.f32 %v1359_v10, %v1358_v12 }
 0x576   :  { %2802 = vtanh.f32 %v3439_v13 }
 0x580   :  { %v2803_v30 = vpop.eup %2802 }
 0x581   :  { %v1362_v34 = vmul.f32 %v2803_v30, %v2801_v26  ;;  %v1891_v30 = vld [vmem:[#allocation9 + $0x18] sm:$0xff] }
 0x583   :  { %1433 = vmatmul.mubr.f32.vlgmr.msra.gmra.mrb[10].mxu0 %v1362_v34  ;;  %1504 = vmatmul.mubr.f32.vlgmr.msra.gmra.mrb[10].mxu1 %v1362_v34 }
 0x584   :  { %2499 = vmatpush1.bf16.msra.mxu0 %v3092_v40  ;;  %2531 = vmatpush1.bf16.msra.mxu1 %v3095_v44 }
 0x585   :  { %2501 = vmatprep.subr.bf16.mxu0 %v3101_v51  ;;  %2533 = vmatprep.subr.bf16.mxu1 %v3105_v52 }
 0x586   :  { %1607 = vmatprep.mubr.f32.mxu0 %v2978_v0  ;;  %1678 = vmatprep.mubr.f32.mxu1 %v2978_v0 }
 0x588   :  { %2503 = vmatpush1.bf16.msra.mxu0 %v3107_v53  ;;  %2535 = vmatpush1.bf16.msra.mxu1 %v3111_v57 }
 0x589   :  { %2505 = vmatprep.subr.bf16.mxu0 %v3117_v1  ;;  %2537 = vmatprep.subr.bf16.mxu1 %v3121_v2 }
 0x58c   :  { %2507 = vmatpush1.bf16.msra.mxu0 %v3123_v3  ;;  %2539 = vmatpush1.bf16.msra.mxu1 %v3127_v7 }
 0x58d   :  { %2509 = vmatprep.subr.bf16.mxu0 %v3133_v14  ;;  %2541 = vmatprep.subr.bf16.mxu1 %v3137_v15 }
 0x590   :  { %2511 = vmatpush1.bf16.msra.mxu0 %v3139_v16  ;;  %2543 = vmatpush1.bf16.msra.mxu1 %v3143_v20 }
 0x591   :  { %2513 = vmatprep.subr.bf16.mxu0 %v3149_v27  ;;  %2545 = vmatprep.subr.bf16.mxu1 %v3153_v28 }
 0x594   :  { %2515 = vmatpush1.bf16.msra.mxu0 %v3155_v29  ;;  %2547 = vmatpush1.bf16.msra.mxu1 %v3159_v33 }
 0x595   :  { %2517 = vmatprep.subr.bf16.mxu0 %v3165_v43  ;;  %2549 = vmatprep.subr.bf16.mxu1 %v3169_v45 }
 0x598   :  { %2519 = vmatpush1.bf16.msra.mxu0 %v3171_v46  ;;  %2551 = vmatpush1.bf16.msra.mxu1 %v3175_v50 }
 0x599   :  { %2521 = vmatprep.subr.bf16.mxu0 %v3181_v61  ;;  %2553 = vmatprep.subr.bf16.mxu1 %v3185_v62 }
 0x59c   :  { %2523 = vmatpush1.bf16.msra.mxu0 %v3187_v63  ;;  %2555 = vmatpush1.bf16.msra.mxu1 %v3191_v8 }
 0x59d   :  { %2525 = vmatprep.subr.bf16.mxu0 %v3197_v18  ;;  %2557 = vmatprep.subr.bf16.mxu1 %v3201_v19 }
 0x5a0   :  { %2527 = vmatpush1.bf16.msra.mxu0 %v3203_v21  ;;  %2559 = vmatpush1.bf16.msra.mxu1 %v3207_v22 }
 0x5a1   :  { %2561 = vmatprep.subr.bf16.mxu0 %v3088_v38  ;;  %2593 = vmatprep.subr.bf16.mxu1 %v3090_v39 }
 0x656   :  { %v1434_v17 = vpop.f32.mrb[10].mxu0  ;;  %v1505_v23 = vpop.f32.mrb[10].mxu1 }
 0x657   :  { %v2658_v24 = vadd.f32 %v1434_v17, %v3259_v31  ;;  %v1436_v25 = vpop.f32.mrb[11].mxu0  ;;  %v1507_v35 = vpop.f32.mrb[11].mxu1  ;;  %v2674_v48 = vadd.f32 %v1505_v23, %v3268_v58  ;;  %v1892_v17 = vld [vmem:[#allocation9 + $0x20] sm:$0xff]  ;;  %v1893_v23 = vld [vmem:[#allocation9 + $0x28] sm:$0xff] }
 0x658   :  { %v2659_v36 = vadd.f32 %v1436_v25, %v3261_v32  ;;  %v2675_v42 = vadd.f32 %v1507_v35, %v3265_v54  ;;  %v1894_v25 = vld [vmem:[#allocation9 + $0x30] sm:$0xff]  ;;  %v1895_v35 = vld [vmem:[#allocation9 + $0x38] sm:$0xff] }
 0x659   :  { %v2034_v37 = vmul.f32 -1.442695, %v2658_v24  ;;  %v2631_v24 = vpack.c.bf16 %v1893_v23, %v1892_v17 }
 0x65a   :  { %v2035_v41 = vmul.f32 -1.442695, %v2659_v36  ;;  %v2036_v47 = vmul.f32 -1.442695, %v2675_v42  ;;  %v2634_v36 = vpack.c.bf16 %v1895_v35, %v1894_v25 }
 0x65b   :  { %2804 = vpow2.f32 %v2034_v37  ;;  %v1896_v37 = vld [vmem:[#allocation9 + $0x40] sm:$0xff] }
 0x65c   :  { %2806 = vpow2.f32 %v2035_v41  ;;  %v1897_v41 = vld [vmem:[#allocation9 + $0x48] sm:$0xff] }
 0x65d   :  { %2808 = vpow2.f32 %v2036_v47  ;;  %v2637_v42 = vpack.c.bf16 %v1897_v41, %v1896_v37  ;;  %v1898_v47 = vld [vmem:[#allocation9 + $0x50] sm:$0xff] }
 0x65e   :  { %2810 = vtanh.f32 %v2674_v48  ;;  %v1899_v48 = vld [vmem:[#allocation9 + $0x58] sm:$0xff] }
 0x665   :  { %v2805_v38 = vpop.eup %2804 }
 0x666   :  { %v2807_v49 = vpop.eup %2806  ;;  %v1517_v39 = vadd.f32 1.0, %v2805_v38  ;;  %v1900_v38 = vld [vmem:[#allocation9 + $0x60] sm:$0xff] }
 0x667   :  { %v1523_v55 = vadd.f32 1.0, %v2807_v49  ;;  %v2809_v56 = vpop.eup %2808  ;;  %v2640_v49 = vpack.c.bf16 %v1899_v48, %v1898_v47 }
 0x668   :  { %2812 = vrcp.f32 %v1517_v39  ;;  %v2811_v59 = vpop.eup %2810  ;;  %v1530_v6 = vadd.f32 1.0, %v2809_v56  ;;  %v1901_v39 = vld [vmem:[#allocation9 + $0x68] sm:$0xff]  ;;  %v1902_v56 = vld [vmem:[#allocation9 + $0x70] sm:$0xff] }
 0x669   :  { %2814 = vrcp.f32 %v1523_v55  ;;  %v2643_v55 = vpack.c.bf16 %v1901_v39, %v1900_v38 }
 0x66a   :  { %2816 = vrcp.f32 %v1530_v6 }
 0x672   :  { %v2813_v60 = vpop.eup %2812 }
 0x673   :  { %v2815_v4 = vpop.eup %2814  ;;  %v1534_v5 = vmul.f32 %v2813_v60, %v2811_v59  ;;  %v1903_v59 = vld [vmem:[#allocation9 + $0x78] sm:$0xff] }
 0x674   :  { %v1533_v9 = vmul.f32 %v2815_v4, %v3439_v13  ;;  %v2817_v11 = vpop.eup %2816  ;;  %v1890_v13 = vld [vmem:[#allocation9 + $0x10] sm:$0xff]  ;;  %v2646_v60 = vpack.c.bf16 %v1903_v59, %v1902_v56 }
 0x675   :  { %v2628_v34 = vpack.c.bf16 %v1891_v30, %v1890_v13 }
 0x676   :  { %v3481_v10 = vadd.f32 %v1534_v5, %v1533_v9 }
 0x678   :  { %2818 = vtanh.f32 %v3481_v10 }
 0x682   :  { %v2819_v12 = vpop.eup %2818 }
 0x683   :  { %v1537_v26 = vmul.f32 %v2819_v12, %v2817_v11 }
 0x685   :  { %1608 = vmatmul.mubr.f32.vlgmr.msra.gmra.mrb[12].mxu0 %v1537_v26  ;;  %1679 = vmatmul.mubr.f32.vlgmr.msra.gmra.mrb[12].mxu1 %v1537_v26 }
 0x686   :  { %2563 = vmatpush1.bf16.msra.mxu0 %v3092_v40  ;;  %2595 = vmatpush1.bf16.msra.mxu1 %v3095_v44 }
 0x687   :  { %2565 = vmatprep.subr.bf16.mxu0 %v3101_v51  ;;  %2597 = vmatprep.subr.bf16.mxu1 %v3105_v52 }
 0x688   :  { %1782 = vmatprep.mubr.f32.mxu0 %v2978_v0  ;;  %1853 = vmatprep.mubr.f32.mxu1 %v2978_v0 }
 0x68a   :  { %2567 = vmatpush1.bf16.msra.mxu0 %v3107_v53  ;;  %2599 = vmatpush1.bf16.msra.mxu1 %v3111_v57 }
 0x68b   :  { %2569 = vmatprep.subr.bf16.mxu0 %v3117_v1  ;;  %2601 = vmatprep.subr.bf16.mxu1 %v3121_v2 }
 0x68e   :  { %2571 = vmatpush1.bf16.msra.mxu0 %v3123_v3  ;;  %2603 = vmatpush1.bf16.msra.mxu1 %v3127_v7 }
 0x68f   :  { %2573 = vmatprep.subr.bf16.mxu0 %v3133_v14  ;;  %2605 = vmatprep.subr.bf16.mxu1 %v3137_v15 }
 0x692   :  { %2575 = vmatpush1.bf16.msra.mxu0 %v3139_v16  ;;  %2607 = vmatpush1.bf16.msra.mxu1 %v3143_v20 }
 0x693   :  { %2577 = vmatprep.subr.bf16.mxu0 %v3149_v27  ;;  %2609 = vmatprep.subr.bf16.mxu1 %v3153_v28 }
 0x696   :  { %2579 = vmatpush1.bf16.msra.mxu0 %v3155_v29  ;;  %2611 = vmatpush1.bf16.msra.mxu1 %v3159_v33 }
 0x697   :  { %2581 = vmatprep.subr.bf16.mxu0 %v3165_v43  ;;  %2613 = vmatprep.subr.bf16.mxu1 %v3169_v45 }
 0x69a   :  { %2583 = vmatpush1.bf16.msra.mxu0 %v3171_v46  ;;  %2615 = vmatpush1.bf16.msra.mxu1 %v3175_v50 }
 0x69b   :  { %2585 = vmatprep.subr.bf16.mxu0 %v3181_v61  ;;  %2617 = vmatprep.subr.bf16.mxu1 %v3185_v62 }
 0x69e   :  { %2587 = vmatpush1.bf16.msra.mxu0 %v3187_v63  ;;  %2619 = vmatpush1.bf16.msra.mxu1 %v3191_v8 }
 0x69f   :  { %2589 = vmatprep.subr.bf16.mxu0 %v3197_v18  ;;  %2621 = vmatprep.subr.bf16.mxu1 %v3201_v19  ;;  %v1888_v18 = vld [vmem:[#allocation9] sm:$0xff]  ;;  %v1889_v19 = vld [vmem:[#allocation9 + $0x8] sm:$0xff] }
 0x6a2   :  { %2591 = vmatpush1.bf16.msra.mxu0 %v3203_v21  ;;  %2623 = vmatpush1.bf16.msra.mxu1 %v3207_v22  ;;  %v2625_v21 = vpack.c.bf16 %v1889_v19, %v1888_v18  ;;  %v2979_v22 = vmov 0.0|0.0  }
 0x6a3   :  { %2624 = vmatprep.subr.bf16.mxu0 %v2979_v22 }
 0x758   :  { %v1609_v40 = vpop.f32.mrb[12].mxu0  ;;  %v1680_v44 = vpop.f32.mrb[12].mxu1 }
 0x759   :  { %v2660_v51 = vadd.f32 %v1609_v40, %v3259_v31  ;;  %v1611_v52 = vpop.f32.mrb[13].mxu0  ;;  %v1682_v53 = vpop.f32.mrb[13].mxu1  ;;  %v2676_v14 = vadd.f32 %v1680_v44, %v3268_v58 }
 0x75a   :  { %v2661_v57 = vadd.f32 %v1611_v52, %v3261_v32  ;;  %v2677_v3 = vadd.f32 %v1682_v53, %v3265_v54 }
 0x75b   :  { %v2037_v1 = vmul.f32 -1.442695, %v2660_v51 }
 0x75c   :  { %v2038_v2 = vmul.f32 -1.442695, %v2661_v57  ;;  %v2039_v7 = vmul.f32 -1.442695, %v2677_v3 }
 0x75d   :  { %2820 = vpow2.f32 %v2037_v1 }
 0x75e   :  { %2822 = vpow2.f32 %v2038_v2 }
 0x75f   :  { %2824 = vpow2.f32 %v2039_v7 }
 0x760   :  { %2826 = vtanh.f32 %v2676_v14 }
 0x767   :  { %v2821_v15 = vpop.eup %2820 }
 0x768   :  { %v2823_v16 = vpop.eup %2822  ;;  %v1692_v20 = vadd.f32 1.0, %v2821_v15 }
 0x769   :  { %v1698_v27 = vadd.f32 1.0, %v2823_v16  ;;  %v2825_v28 = vpop.eup %2824 }
 0x76a   :  { %2828 = vrcp.f32 %v1692_v20  ;;  %v2827_v29 = vpop.eup %2826  ;;  %v1705_v46 = vadd.f32 1.0, %v2825_v28  ;;  %v2043_v20 = vld [vmem:[%s3550_s5] ss:$0 sm:$0xff] }
 0x76b   :  { %2830 = vrcp.f32 %v1698_v27 }
 0x76c   :  { %2832 = vrcp.f32 %v1705_v46 }
 0x774   :  { %v2829_v33 = vpop.eup %2828 }
 0x775   :  { %v2831_v43 = vpop.eup %2830  ;;  %v1709_v45 = vmul.f32 %v2829_v33, %v2827_v29 }
 0x776   :  { %v1708_v50 = vmul.f32 %v2831_v43, %v3481_v10  ;;  %v2833_v62 = vpop.eup %2832 }
 0x778   :  { %v3521_v61 = vadd.f32 %v1709_v45, %v1708_v50 }
 0x77a   :  { %2834 = vtanh.f32 %v3521_v61 }
 0x784   :  { %v2835_v63 = vpop.eup %2834 }
 0x785   :  { %v1712_v8 = vmul.f32 %v2835_v63, %v2833_v62 }
 0x787   :  { %1783 = vmatmul.mubr.f32.vlgmr.msra.gmra.mrb[14].mxu0 %v1712_v8  ;;  %1854 = vmatmul.mubr.f32.vlgmr.msra.gmra.mrb[14].mxu1 %v1712_v8 }
 0x788   :  { %2626 = vmatpush3.bf16.msra.mxu0 %v2625_v21  ;;  %2093 = vmatprep.mubr.msk.f32.mxu0 %vm2980_vm2, %v2978_v0 }
 0x789   :  { %2627 = vmatprep.subr.bf16.mxu0 %v2979_v22 }
 0x78c   :  { %2629 = vmatpush3.bf16.msra.mxu0 %v2628_v34 }
 0x78d   :  { %2630 = vmatprep.subr.bf16.mxu0 %v2979_v22 }
 0x790   :  { %2632 = vmatpush3.bf16.msra.mxu0 %v2631_v24 }
 0x791   :  { %2633 = vmatprep.subr.bf16.mxu0 %v2979_v22 }
 0x794   :  { %2635 = vmatpush3.bf16.msra.mxu0 %v2634_v36 }
 0x795   :  { %2636 = vmatprep.subr.bf16.mxu0 %v2979_v22 }
 0x798   :  { %2638 = vmatpush3.bf16.msra.mxu0 %v2637_v42 }
 0x799   :  { %2639 = vmatprep.subr.bf16.mxu0 %v2979_v22 }
 0x79c   :  { %2641 = vmatpush3.bf16.msra.mxu0 %v2640_v49 }
 0x79d   :  { %2642 = vmatprep.subr.bf16.mxu0 %v2979_v22 }
 0x7a0   :  { %2644 = vmatpush3.bf16.msra.mxu0 %v2643_v55 }
 0x7a1   :  { %2645 = vmatprep.subr.bf16.mxu0 %v2979_v22 }
 0x7a4   :  { %2647 = vmatpush3.bf16.msra.mxu0 %v2646_v60 }
 0x85a   :  { %v1784_v4 = vpop.f32.mrb[14].mxu0  ;;  %v1855_v5 = vpop.f32.mrb[14].mxu1 }
 0x85b   :  { %v2662_v6 = vadd.f32 %v1784_v4, %v3259_v31  ;;  %v1786_v9 = vpop.f32.mrb[15].mxu0  ;;  %v1857_v10 = vpop.f32.mrb[15].mxu1  ;;  %v2678_v44 = vadd.f32 %v1855_v5, %v3268_v58 }
 0x85c   :  { %v2663_v11 = vadd.f32 %v1786_v9, %v3261_v32  ;;  %v2679_v0 = vadd.f32 %v1857_v10, %v3265_v54 }
 0x85d   :  { %v2040_v12 = vmul.f32 -1.442695, %v2662_v6 }
 0x85e   :  { %v2041_v26 = vmul.f32 -1.442695, %v2663_v11  ;;  %v2042_v40 = vmul.f32 -1.442695, %v2679_v0 }
 0x85f   :  { %2836 = vpow2.f32 %v2040_v12 }
 0x860   :  { %2838 = vpow2.f32 %v2041_v26 }
 0x861   :  { %2840 = vpow2.f32 %v2042_v40 }
 0x862   :  { %2842 = vtanh.f32 %v2678_v44 }
 0x869   :  { %v2837_v51 = vpop.eup %2836 }
 0x86a   :  { %v2839_v52 = vpop.eup %2838  ;;  %v1867_v53 = vadd.f32 1.0, %v2837_v51 }
 0x86b   :  { %v1873_v57 = vadd.f32 1.0, %v2839_v52  ;;  %v2841_v31 = vpop.eup %2840 }
 0x86c   :  { %2844 = vrcp.f32 %v1867_v53  ;;  %v2843_v1 = vpop.eup %2842  ;;  %v1880_v7 = vadd.f32 1.0, %v2841_v31 }
 0x86d   :  { %2846 = vrcp.f32 %v1873_v57 }
 0x86e   :  { %2848 = vrcp.f32 %v1880_v7 }
 0x876   :  { %v2845_v32 = vpop.eup %2844 }
 0x877   :  { %v2847_v2 = vpop.eup %2846  ;;  %v1884_v3 = vmul.f32 %v2845_v32, %v2843_v1 }
 0x878   :  { %v1883_v14 = vmul.f32 %v2847_v2, %v3521_v61  ;;  %v2849_v58 = vpop.eup %2848 }
 0x87a   :  { %v1885_v54 = vadd.f32 %v1884_v3, %v1883_v14 }
 0x87c   :  { %2850 = vtanh.f32 %v1885_v54 }
 0x886   :  { %v2851_v15 = vpop.eup %2850 }
 0x887   :  { %v1887_v16 = vmul.f32 %v2851_v15, %v2849_v58 }
 0x889   :  { %2094 = vmatmul.mubr.f32.vlgmr.msra.gmra.mrb[16].mxu0 %v1887_v16 }
 0x95c   :  { %v1977_v27 = vpop.f32.mrb[16].mxu0 }
 0x95d   :  { %v1978_v28 = vadd.f32 %v2043_v20, %v1977_v27  ;;  %v2095_v29 = vpop.f32.mrb[17].mxu0 }
 0x95f   :  { %1981 = vst [vmem:[#allocation11] sm:$0xff] %v1978_v28 }
 0x960   :  { %2951 = shalt.err (!%p2948_p8)
}
 0x961   :  { %s2952_s28 = scalar_lea.hbm %s3551_s6, 128 }
 0x962   :  { %p2953_p9 = scmp.ne.s32.totalorder %s3551_s6, %s2952_s28  ;;  %p2956_p10 = scmp.lt.u32.totalorder %s2952_s28, %s3551_s6 }
 0x964   :  { %p2958_p11 = pnand %p2956_p10, %p2953_p9 }
 0x966   :  { %2961 = shalt.err (!%p2958_p11)
}
 0x967   :  { %1991 = dma.vmem_to_hbm [thread:$0]  %s1989_s24, 128, %s3551_s6, [#allocation5]  }
 0x968   :  { %2968 = dma.done.wait [#allocation5], 128  }
 0x969   :  { %2969 = vsyncadd [#allocation5], 4294967168 }
 0x96a   :  { %1995 = vsyncpa [#allocation4], 1 }
 0x96b   :  { %1996 = vsyncpa [#allocation7], 1 }
 0x96c   :  { %1997 = vsyncpa [#allocation10], 1 }
 0x96d   :  { %1998 = vsyncpa [#allocation5], 1 }

</bundles_post_ra>
